<compile_context>
chip_gen: v5e
topology: v5e:2x2
jax: 0.10.0
libtpu: 0.0.40
codegen_flags: <defaults>
</compile_context>

<pallas_src>
import functools

import jax
import jax.numpy as jnp
from jax.experimental import pallas as pl
from jax.experimental.pallas import tpu as pltpu

LANE = 128   # lane width / feature padding
TM = 128     # node row tile
TK = 128     # contraction (neighbor) tile


def _round_up(x, m):
    return (x + m - 1) // m * m


# ---------------------------------------------------------------------------
# Kernel 1: per-node transform (fused BN+ReLU of previous layer + h@W [+ skip])
# ---------------------------------------------------------------------------

def _make_transform_kernel(has_bn, has_linear, has_bias):
    has_skip = has_linear or has_bias

    def kernel(*refs):
        idx = 0
        h_ref = refs[idx]; idx += 1
        ss_ref = None
        if has_bn:
            ss_ref = refs[idx]; idx += 1
        w_ref = refs[idx]; idx += 1
        wl_ref = None
        if has_linear:
            wl_ref = refs[idx]; idx += 1
        b_ref = None
        if has_bias:
            b_ref = refs[idx]; idx += 1
        hw_ref = refs[idx]; idx += 1
        skip_ref = refs[idx] if has_skip else None

        x = h_ref[...].astype(jnp.float32)
        if has_bn:
            ss = ss_ref[...]                                   # (2, F_in) f32
            x = jnp.maximum(x * ss[0:1, :] + ss[1:2, :], 0.0)  # BN + ReLU
        xb = x.astype(jnp.bfloat16)

        hw = jnp.dot(xb, w_ref[...], preferred_element_type=jnp.float32)
        hw_ref[...] = hw.astype(hw_ref.dtype)

        if has_skip:
            if has_linear:
                skip = jnp.dot(xb, wl_ref[...],
                               preferred_element_type=jnp.float32)
            else:
                skip = jnp.zeros_like(hw)
            if has_bias:
                skip = skip + b_ref[...].astype(jnp.float32)
            skip_ref[...] = skip.astype(skip_ref.dtype)

    return kernel


def transform_layer(h, w, w_lin, bias, scale_shift, *, tm=TM):
    """hw = [BN+ReLU](h) @ W ;  skip = [BN+ReLU](h) @ W_lin + bias (optional)."""
    n_pad, f_in = h.shape
    f_out = w.shape[1]
    has_bn = scale_shift is not None
    has_linear = w_lin is not None
    has_bias = bias is not None
    has_skip = has_linear or has_bias

    in_specs = [pl.BlockSpec((tm, f_in), lambda i: (i, 0))]
    inputs = [h]
    if has_bn:
        in_specs.append(pl.BlockSpec((2, f_in), lambda i: (0, 0)))
        inputs.append(scale_shift)
    in_specs.append(pl.BlockSpec((f_in, f_out), lambda i: (0, 0)))
    inputs.append(w)
    if has_linear:
        in_specs.append(pl.BlockSpec((f_in, f_out), lambda i: (0, 0)))
        inputs.append(w_lin)
    if has_bias:
        in_specs.append(pl.BlockSpec((1, f_out), lambda i: (0, 0)))
        inputs.append(bias.reshape(1, f_out))

    hw_sds = jax.ShapeDtypeStruct((n_pad, f_out), jnp.bfloat16)
    hw_spec = pl.BlockSpec((tm, f_out), lambda i: (i, 0))
    if has_skip:
        out_shape = (hw_sds, jax.ShapeDtypeStruct((n_pad, f_out), jnp.float32))
        out_specs = (hw_spec, pl.BlockSpec((tm, f_out), lambda i: (i, 0)))
    else:
        out_shape = hw_sds
        out_specs = hw_spec

    n_mm = 1 + (1 if has_linear else 0)
    flops = 2 * n_pad * f_in * f_out * n_mm
    bytes_accessed = (h.size * h.dtype.itemsize + w.size * 2 * n_mm
                      + n_pad * f_out * (2 + (4 if has_skip else 0)))
    return pl.pallas_call(
        _make_transform_kernel(has_bn, has_linear, has_bias),
        out_shape=out_shape,
        grid=(n_pad // tm,),
        in_specs=in_specs,
        out_specs=out_specs,
        compiler_params=pltpu.CompilerParams(
            dimension_semantics=("parallel",),
            vmem_limit_bytes=32 * 1024 * 1024),
        cost_estimate=pl.CostEstimate(flops=flops, transcendentals=0,
                                      bytes_accessed=bytes_accessed),
    )(*inputs)


# ---------------------------------------------------------------------------
# Kernel 2: tiled aggregation  out = A_hat @ hw (+ skip)
# ---------------------------------------------------------------------------

def _make_aggregate_kernel(has_skip):
    def kernel(*refs):
        if has_skip:
            a_ref, hw_ref, skip_ref, o_ref, acc_ref = refs
        else:
            a_ref, hw_ref, o_ref, acc_ref = refs
            skip_ref = None

        @pl.when(pl.program_id(1) == 0)
        def _init():
            acc_ref[...] = jnp.zeros_like(acc_ref)

        acc_ref[...] += jnp.dot(a_ref[...], hw_ref[...],
                                preferred_element_type=jnp.float32)

        @pl.when(pl.program_id(1) == pl.num_programs(1) - 1)
        def _fin():
            r = acc_ref[...]
            if has_skip:
                r = r + skip_ref[...].astype(jnp.float32)
            o_ref[...] = r.astype(o_ref.dtype)

    return kernel


def aggregate(a_hat, hw, skip=None, *, tm=TM, tk=TK):
    n_pad = a_hat.shape[0]
    f_out = hw.shape[1]
    has_skip = skip is not None

    in_specs = [pl.BlockSpec((tm, tk), lambda i, k: (i, k)),
                pl.BlockSpec((tk, f_out), lambda i, k: (k, 0))]
    inputs = [a_hat, hw]
    if has_skip:
        in_specs.append(pl.BlockSpec((tm, f_out), lambda i, k: (i, 0)))
        inputs.append(skip)

    flops = 2 * n_pad * n_pad * f_out
    bytes_accessed = (a_hat.size * 2 + hw.size * 2
                      + (skip.size * 4 if has_skip else 0) + n_pad * f_out * 4)
    return pl.pallas_call(
        _make_aggregate_kernel(has_skip),
        out_shape=jax.ShapeDtypeStruct((n_pad, f_out), jnp.float32),
        grid=(n_pad // tm, n_pad // tk),
        in_specs=in_specs,
        out_specs=pl.BlockSpec((tm, f_out), lambda i, k: (i, 0)),
        scratch_shapes=[pltpu.VMEM((tm, f_out), jnp.float32)],
        compiler_params=pltpu.CompilerParams(
            dimension_semantics=("parallel", "arbitrary"),
            vmem_limit_bytes=32 * 1024 * 1024),
        cost_estimate=pl.CostEstimate(flops=flops, transcendentals=0,
                                      bytes_accessed=bytes_accessed),
    )(*inputs)


# ---------------------------------------------------------------------------
# Kernel 3: BatchNorm batch statistics (per-column sum / sum-of-squares)
# ---------------------------------------------------------------------------

def _make_bn_stats_kernel(tm, n_real):
    def kernel(x_ref, stats_ref):
        @pl.when(pl.program_id(0) == 0)
        def _init():
            stats_ref[...] = jnp.zeros_like(stats_ref)

        x = x_ref[...]
        row = (jax.lax.broadcasted_iota(jnp.int32, x.shape, 0)
               + pl.program_id(0) * tm)
        x = jnp.where(row < n_real, x, 0.0)        # mask padded node rows
        s = jnp.sum(x, axis=0, keepdims=True)
        q = jnp.sum(x * x, axis=0, keepdims=True)
        stats_ref[...] += jnp.concatenate([s, q], axis=0)

    return kernel


def bn_stats(h, n_real, *, tm=TM):
    n_pad, f = h.shape
    return pl.pallas_call(
        _make_bn_stats_kernel(tm, n_real),
        out_shape=jax.ShapeDtypeStruct((2, f), jnp.float32),
        grid=(n_pad // tm,),
        in_specs=[pl.BlockSpec((tm, f), lambda i: (i, 0))],
        out_specs=pl.BlockSpec((2, f), lambda i: (0, 0)),
        compiler_params=pltpu.CompilerParams(
            dimension_semantics=("arbitrary",)),
    )(h)


# ---------------------------------------------------------------------------
# Model wrapper (glue in plain JAX)
# ---------------------------------------------------------------------------

def init_gcn_params(key, in_feats, n_hidden, n_classes, n_layers):
    """Params with feature dims zero-padded to multiples of 128, weights bf16."""
    params = {"conv_w": [], "lin_w": [], "bias": [], "bn_gamma": [], "bn_beta": []}
    for i in range(n_layers):
        in_h = n_hidden if i > 0 else in_feats
        out_h = n_hidden if i < n_layers - 1 else n_classes
        in_p, out_p = _round_up(in_h, LANE), _round_up(out_h, LANE)
        key, k1, k2 = jax.random.split(key, 3)
        scale = 1.0 / jnp.sqrt(jnp.float32(in_h))
        w = jax.random.uniform(k1, (in_h, out_h), jnp.float32, -scale, scale)
        wl = jax.random.uniform(k2, (in_h, out_h), jnp.float32, -scale, scale)
        params["conv_w"].append(
            jnp.zeros((in_p, out_p), jnp.float32).at[:in_h, :out_h].set(w)
            .astype(jnp.bfloat16))
        params["lin_w"].append(
            jnp.zeros((in_p, out_p), jnp.float32).at[:in_h, :out_h].set(wl)
            .astype(jnp.bfloat16))
        # conv bias only exists on the last layer (zeros placeholder elsewhere).
        params["bias"].append(jnp.zeros((out_p,), jnp.float32))
        if i < n_layers - 1:
            params["bn_gamma"].append(
                jnp.zeros((out_p,), jnp.float32).at[:out_h].set(1.0))
            params["bn_beta"].append(jnp.zeros((out_p,), jnp.float32))
    return params


@functools.partial(jax.jit, static_argnames=("n_real", "n_layers", "use_linear"))
def gcn_forward(a_hat_pad, feat_pad, params, *, n_real, n_layers, use_linear=True):
    h = feat_pad.astype(jnp.float32)   # dropout0: eval-mode identity
    scale_shift = None                 # BN+ReLU of the previous layer (fused)
    for i in range(n_layers):
        is_last = i == n_layers - 1
        w_lin = params["lin_w"][i] if use_linear else None
        bias = params["bias"][i] if is_last else None

        outs = transform_layer(h, params["conv_w"][i], w_lin, bias, scale_shift)
        if (w_lin is not None) or (bias is not None):
            hw, skip = outs
        else:
            hw, skip = outs, None

        h = aggregate(a_hat_pad, hw, skip)   # = A_hat@(xW) + xW_lin + bias

        if not is_last:
            stats = bn_stats(h, n_real)
            mean = stats[0] / n_real
            var = jnp.maximum(stats[1] / n_real - mean * mean, 0.0)  # biased var
            inv = jax.lax.rsqrt(var + 1e-5)
            scale = params["bn_gamma"][i] * inv
            shift = params["bn_beta"][i] - mean * scale
            scale_shift = jnp.stack([scale, shift], axis=0)  # (2, F_pad) f32
            # dropout: eval-mode identity
        else:
            scale_shift = None
    return h


def build_normalized_adjacency(key, n_nodes):
    """Dense A_hat = D_in^{-1/2} A^T D_out^{-1/2} (DGL GraphConv norm='both')."""
    a = (jax.random.uniform(key, (n_nodes, n_nodes)) < 0.15).astype(jnp.float32)
    deg_out = jnp.clip(jnp.sum(a, axis=1), 1.0, None)   # out-degree of src nodes
    deg_in = jnp.clip(jnp.sum(a, axis=0), 1.0, None)    # in-degree of dst nodes
    a_hat = a.T * (deg_out[None, :] ** -0.5) * (deg_in[:, None] ** -0.5)
    return a_hat.astype(jnp.float32)


if __name__ == "__main__":
    N = 256          # nodes
    IN_FEATS = 32
    N_HIDDEN = 64
    N_CLASSES = 16
    N_LAYERS = 3

    key = jax.random.PRNGKey(0)
    k_adj, k_feat, k_params = jax.random.split(key, 3)

    a_hat = build_normalized_adjacency(k_adj, N)
    feat = jax.random.normal(k_feat, (N, IN_FEATS), jnp.float32)
    params = init_gcn_params(k_params, IN_FEATS, N_HIDDEN, N_CLASSES, N_LAYERS)

    # Pad nodes to tile size and features to lane width; zero padding is exact
    # (pad rows are masked in BN statistics, pad cols carry zero weights).
    n_pad = _round_up(N, max(TM, TK))
    f_in_pad = _round_up(IN_FEATS, LANE)
    a_hat_p = (jnp.zeros((n_pad, n_pad), jnp.bfloat16)
               .at[:N, :N].set(a_hat.astype(jnp.bfloat16)))
    feat_p = jnp.zeros((n_pad, f_in_pad), jnp.float32).at[:N, :IN_FEATS].set(feat)

    out_pad = gcn_forward(a_hat_p, feat_p, params,
                          n_real=N, n_layers=N_LAYERS, use_linear=True)
    out_pad = jax.block_until_ready(out_pad)
    logits = out_pad[:N, :N_CLASSES]

    assert logits.shape == (N, N_CLASSES), logits.shape
    assert bool(jnp.all(jnp.isfinite(logits)))
    print("KERNEL_OK")
</pallas_src>

<mosaic_0001>
module attributes {stable_mosaic.version = 11 : i64} {
  func.func @kernel(%arg0: i32, %arg1: memref<128x128xf32, #tpu.memory_space<vmem>>, %arg2: memref<2x128xf32, #tpu.memory_space<vmem>>) attributes {dimension_semantics = [#tpu.dimension_semantics<arbitrary>], iteration_bounds = array<i64: 2>, scalar_prefetch = 0 : i64, scratch_operands = 0 : i64, tpu.core_type = #tpu.core_type<tc>, window_params = [{transform_indices = @transform_0, window_bounds = array<i64: 128, 128>}, {pipeline_mode = #tpu.pipeline_mode<synchronous>, transform_indices = @transform_1, window_bounds = array<i64: 2, 128>}]} {
    %c0_i32 = arith.constant 0 : i32
    %0 = arith.cmpi eq, %arg0, %c0_i32 : i32
    %1 = arith.extui %0 : i1 to i32
    %c0_i32_0 = arith.constant 0 : i32
    %2 = arith.cmpi ne, %1, %c0_i32_0 : i32
    scf.if %2 {
      %cst_8 = arith.constant 0.000000e+00 : f32
      %21 = vector.broadcast %cst_8 : f32 to vector<2x128xf32>
      %c0_9 = arith.constant 0 : index
      %c0_10 = arith.constant 0 : index
      %22 = vector.load %arg2[%c0_9, %c0_10] : memref<2x128xf32, #tpu.memory_space<vmem>>, vector<2x128xf32>
      tpu.vector_store %arg2[%c0_9, %c0_10], %21 {strides = array<i32>} : memref<2x128xf32, #tpu.memory_space<vmem>>, vector<2x128xf32>,
    } else {
    }
    %c0 = arith.constant 0 : index
    %c0_1 = arith.constant 0 : index
    %3 = vector.load %arg1[%c0, %c0_1] : memref<128x128xf32, #tpu.memory_space<vmem>>, vector<128x128xf32>
    %4 = tpu.iota {dimensions = array<i32: 0>} : vector<128x128xi32>
    %c128_i32 = arith.constant 128 : i32
    %5 = arith.muli %arg0, %c128_i32 : i32
    %6 = vector.broadcast %5 : i32 to vector<128x128xi32>
    %7 = arith.addi %4, %6 : vector<128x128xi32>
    %c256_i32 = arith.constant 256 : i32
    %8 = vector.broadcast %c256_i32 : i32 to vector<128x128xi32>
    %9 = arith.cmpi slt, %7, %8 : vector<128x128xi32>
    %cst = arith.constant 0.000000e+00 : f32
    %10 = vector.broadcast %cst : f32 to vector<128x128xf32>
    %11 = arith.select %9, %3, %10 : vector<128x128xi1>, vector<128x128xf32>
    %cst_2 = arith.constant dense<0.000000e+00> : vector<128xf32>
    %12 = vector.multi_reduction <add>, %11, %cst_2 [0] : vector<128x128xf32> to vector<128xf32>
    %13 = vector.shape_cast %12 : vector<128xf32> to vector<1x128xf32>
    %14 = arith.mulf %11, %11 : vector<128x128xf32>
    %cst_3 = arith.constant dense<0.000000e+00> : vector<128xf32>
    %15 = vector.multi_reduction <add>, %14, %cst_3 [0] : vector<128x128xf32> to vector<128xf32>
    %16 = vector.shape_cast %15 : vector<128xf32> to vector<1x128xf32>
    %c0_4 = arith.constant 0 : index
    %c0_5 = arith.constant 0 : index
    %17 = vector.load %arg2[%c0_4, %c0_5] : memref<2x128xf32, #tpu.memory_space<vmem>>, vector<2x128xf32>
    %18 = tpu.concatenate %13, %16 in 0 : vector<1x128xf32>, vector<1x128xf32> -> vector<2x128xf32>
    %19 = arith.addf %17, %18 : vector<2x128xf32>
    %c0_6 = arith.constant 0 : index
    %c0_7 = arith.constant 0 : index
    %20 = vector.load %arg2[%c0_6, %c0_7] : memref<2x128xf32, #tpu.memory_space<vmem>>, vector<2x128xf32>
    tpu.vector_store %arg2[%c0_6, %c0_7], %19 {strides = array<i32>} : memref<2x128xf32, #tpu.memory_space<vmem>>, vector<2x128xf32>,
    return
  }
  func.func @transform_0(%arg0: i32) -> (i32, i32) {
    %c0_i32 = arith.constant 0 : i32
    %c0_i32_0 = arith.constant 0 : i32
    return %arg0, %c0_i32 : i32, i32
  }
  func.func @transform_1(%arg0: i32) -> (i32, i32) {
    %c0_i32 = arith.constant 0 : i32
    %c0_i32_0 = arith.constant 0 : i32
    %c0_i32_1 = arith.constant 0 : i32
    return %c0_i32, %c0_i32_0 : i32, i32
  }
}

module attributes {stable_mosaic.version = 11 : i64} {
  func.func @kernel(%arg0: i32, %arg1: memref<128x128xf32, #tpu.memory_space<vmem>>, %arg2: memref<128x128xbf16, #tpu.memory_space<vmem>>, %arg3: memref<128x128xbf16, #tpu.memory_space<vmem>>, %arg4: memref<128x128xbf16, #tpu.memory_space<vmem>>, %arg5: memref<128x128xf32, #tpu.memory_space<vmem>>) attributes {dimension_semantics = [#tpu.dimension_semantics<parallel>], iteration_bounds = array<i64: 2>, scalar_prefetch = 0 : i64, scratch_operands = 0 : i64, tpu.core_type = #tpu.core_type<tc>, window_params = [{transform_indices = @transform_0, window_bounds = array<i64: 128, 128>}, {pipeline_mode = #tpu.pipeline_mode<synchronous>, transform_indices = @transform_1, window_bounds = array<i64: 128, 128>}, {pipeline_mode = #tpu.pipeline_mode<synchronous>, transform_indices = @transform_2, window_bounds = array<i64: 128, 128>}, {transform_indices = @transform_3, window_bounds = array<i64: 128, 128>}, {transform_indices = @transform_4, window_bounds = array<i64: 128, 128>}]} {
    %c0 = arith.constant 0 : index
    %c0_0 = arith.constant 0 : index
    %0 = vector.load %arg1[%c0, %c0_0] : memref<128x128xf32, #tpu.memory_space<vmem>>, vector<128x128xf32>
    %1 = arith.truncf %0 : vector<128x128xf32> to vector<128x128xbf16>
    %c0_1 = arith.constant 0 : index
    %c0_2 = arith.constant 0 : index
    %2 = vector.load %arg2[%c0_1, %c0_2] : memref<128x128xbf16, #tpu.memory_space<vmem>>, vector<128x128xbf16>
    %cst = arith.constant dense<0.000000e+00> : vector<128x128xf32>
    %3 = tpu.matmul %1, %2, %cst {dimension_numbers = #tpu.dot_dimension_numbers<[1], [0], [0], [1], [0, 0, 1, 1], [], []>} : vector<128x128xbf16>, vector<128x128xbf16>, vector<128x128xf32> -> vector<128x128xf32>
    %4 = arith.truncf %3 : vector<128x128xf32> to vector<128x128xbf16>
    %c0_3 = arith.constant 0 : index
    %c0_4 = arith.constant 0 : index
    %5 = vector.load %arg4[%c0_3, %c0_4] : memref<128x128xbf16, #tpu.memory_space<vmem>>, vector<128x128xbf16>
    tpu.vector_store %arg4[%c0_3, %c0_4], %4 {strides = array<i32>} : memref<128x128xbf16, #tpu.memory_space<vmem>>, vector<128x128xbf16>,
    %c0_5 = arith.constant 0 : index
    %c0_6 = arith.constant 0 : index
    %6 = vector.load %arg3[%c0_5, %c0_6] : memref<128x128xbf16, #tpu.memory_space<vmem>>, vector<128x128xbf16>
    %cst_7 = arith.constant dense<0.000000e+00> : vector<128x128xf32>
    %7 = tpu.matmul %1, %6, %cst_7 {dimension_numbers = #tpu.dot_dimension_numbers<[1], [0], [0], [1], [0, 0, 1, 1], [], []>} : vector<128x128xbf16>, vector<128x128xbf16>, vector<128x128xf32> -> vector<128x128xf32>
    %c0_8 = arith.constant 0 : index
    %c0_9 = arith.constant 0 : index
    %8 = vector.load %arg5[%c0_8, %c0_9] : memref<128x128xf32, #tpu.memory_space<vmem>>, vector<128x128xf32>
    tpu.vector_store %arg5[%c0_8, %c0_9], %7 {strides = array<i32>} : memref<128x128xf32, #tpu.memory_space<vmem>>, vector<128x128xf32>,
    return
  }
  func.func @transform_0(%arg0: i32) -> (i32, i32) {
    %c0_i32 = arith.constant 0 : i32
    %c0_i32_0 = arith.constant 0 : i32
    return %arg0, %c0_i32 : i32, i32
  }
  func.func @transform_1(%arg0: i32) -> (i32, i32) {
    %c0_i32 = arith.constant 0 : i32
    %c0_i32_0 = arith.constant 0 : i32
    %c0_i32_1 = arith.constant 0 : i32
    return %c0_i32, %c0_i32_0 : i32, i32
  }
  func.func @transform_2(%arg0: i32) -> (i32, i32) {
    %c0_i32 = arith.constant 0 : i32
    %c0_i32_0 = arith.constant 0 : i32
    %c0_i32_1 = arith.constant 0 : i32
    return %c0_i32, %c0_i32_0 : i32, i32
  }
  func.func @transform_3(%arg0: i32) -> (i32, i32) {
    %c0_i32 = arith.constant 0 : i32
    %c0_i32_0 = arith.constant 0 : i32
    return %arg0, %c0_i32 : i32, i32
  }
  func.func @transform_4(%arg0: i32) -> (i32, i32) {
    %c0_i32 = arith.constant 0 : i32
    %c0_i32_0 = arith.constant 0 : i32
    return %arg0, %c0_i32 : i32, i32
  }
}

module attributes {stable_mosaic.version = 11 : i64} {
  func.func @kernel(%arg0: i32, %arg1: i32, %arg2: memref<128x128xbf16, #tpu.memory_space<vmem>>, %arg3: memref<128x128xbf16, #tpu.memory_space<vmem>>, %arg4: memref<128x128xf32, #tpu.memory_space<vmem>>, %arg5: memref<128x128xf32, #tpu.memory_space<vmem>>, %arg6: memref<128x128xf32, #tpu.memory_space<vmem>>) attributes {dimension_semantics = [#tpu.dimension_semantics<parallel>, #tpu.dimension_semantics<arbitrary>], iteration_bounds = array<i64: 2, 2>, scalar_prefetch = 0 : i64, scratch_operands = 1 : i64, tpu.core_type = #tpu.core_type<tc>, window_params = [{transform_indices = @transform_0, window_bounds = array<i64: 128, 128>}, {transform_indices = @transform_1, window_bounds = array<i64: 128, 128>}, {transform_indices = @transform_2, window_bounds = array<i64: 128, 128>}, {transform_indices = @transform_3, window_bounds = array<i64: 128, 128>}]} {
    %c0_i32 = arith.constant 0 : i32
    %0 = arith.cmpi eq, %arg1, %c0_i32 : i32
    %1 = arith.extui %0 : i1 to i32
    %c0_i32_0 = arith.constant 0 : i32
    %2 = arith.cmpi ne, %1, %c0_i32_0 : i32
    scf.if %2 {
      %cst_9 = arith.constant 0.000000e+00 : f32
      %12 = vector.broadcast %cst_9 : f32 to vector<128x128xf32>
      %c0_10 = arith.constant 0 : index
      %c0_11 = arith.constant 0 : index
      %13 = vector.load %arg6[%c0_10, %c0_11] : memref<128x128xf32, #tpu.memory_space<vmem>>, vector<128x128xf32>
      tpu.vector_store %arg6[%c0_10, %c0_11], %12 {strides = array<i32>} : memref<128x128xf32, #tpu.memory_space<vmem>>, vector<128x128xf32>,
    } else {
    }
    %c0 = arith.constant 0 : index
    %c0_1 = arith.constant 0 : index
    %3 = vector.load %arg6[%c0, %c0_1] : memref<128x128xf32, #tpu.memory_space<vmem>>, vector<128x128xf32>
    %c0_2 = arith.constant 0 : index
    %c0_3 = arith.constant 0 : index
    %4 = vector.load %arg2[%c0_2, %c0_3] : memref<128x128xbf16, #tpu.memory_space<vmem>>, vector<128x128xbf16>
    %c0_4 = arith.constant 0 : index
    %c0_5 = arith.constant 0 : index
    %5 = vector.load %arg3[%c0_4, %c0_5] : memref<128x128xbf16, #tpu.memory_space<vmem>>, vector<128x128xbf16>
    %cst = arith.constant dense<0.000000e+00> : vector<128x128xf32>
    %6 = tpu.matmul %4, %5, %cst {dimension_numbers = #tpu.dot_dimension_numbers<[1], [0], [0], [1], [0, 0, 1, 1], [], []>} : vector<128x128xbf16>, vector<128x128xbf16>, vector<128x128xf32> -> vector<128x128xf32>
    %7 = arith.addf %3, %6 : vector<128x128xf32>
    %c0_6 = arith.constant 0 : index
    %c0_7 = arith.constant 0 : index
    %8 = vector.load %arg6[%c0_6, %c0_7] : memref<128x128xf32, #tpu.memory_space<vmem>>, vector<128x128xf32>
    tpu.vector_store %arg6[%c0_6, %c0_7], %7 {strides = array<i32>} : memref<128x128xf32, #tpu.memory_space<vmem>>, vector<128x128xf32>,
    %c1_i32 = arith.constant 1 : i32
    %9 = arith.cmpi eq, %arg1, %c1_i32 : i32
    %10 = arith.extui %9 : i1 to i32
    %c0_i32_8 = arith.constant 0 : i32
    %11 = arith.cmpi ne, %10, %c0_i32_8 : i32
    scf.if %11 {
      %c0_9 = arith.constant 0 : index
      %c0_10 = arith.constant 0 : index
      %12 = vector.load %arg6[%c0_9, %c0_10] : memref<128x128xf32, #tpu.memory_space<vmem>>, vector<128x128xf32>
      %c0_11 = arith.constant 0 : index
      %c0_12 = arith.constant 0 : index
      %13 = vector.load %arg4[%c0_11, %c0_12] : memref<128x128xf32, #tpu.memory_space<vmem>>, vector<128x128xf32>
      %14 = arith.addf %12, %13 : vector<128x128xf32>
      %c0_13 = arith.constant 0 : index
      %c0_14 = arith.constant 0 : index
      %15 = vector.load %arg5[%c0_13, %c0_14] : memref<128x128xf32, #tpu.memory_space<vmem>>, vector<128x128xf32>
      tpu.vector_store %arg5[%c0_13, %c0_14], %14 {strides = array<i32>} : memref<128x128xf32, #tpu.memory_space<vmem>>, vector<128x128xf32>,
    } else {
    }
    return
  }
  func.func @transform_0(%arg0: i32, %arg1: i32) -> (i32, i32) {
    %c0_i32 = arith.constant 0 : i32
    return %arg0, %arg1 : i32, i32
  }
  func.func @transform_1(%arg0: i32, %arg1: i32) -> (i32, i32) {
    %c0_i32 = arith.constant 0 : i32
    %c0_i32_0 = arith.constant 0 : i32
    return %arg1, %c0_i32 : i32, i32
  }
  func.func @transform_2(%arg0: i32, %arg1: i32) -> (i32, i32) {
    %c0_i32 = arith.constant 0 : i32
    %c0_i32_0 = arith.constant 0 : i32
    return %arg0, %c0_i32 : i32, i32
  }
  func.func @transform_3(%arg0: i32, %arg1: i32) -> (i32, i32) {
    %c0_i32 = arith.constant 0 : i32
    %c0_i32_0 = arith.constant 0 : i32
    return %arg0, %c0_i32 : i32, i32
  }
}

module attributes {stable_mosaic.version = 11 : i64} {
  func.func @kernel(%arg0: i32, %arg1: memref<128x128xf32, #tpu.memory_space<vmem>>, %arg2: memref<2x128xf32, #tpu.memory_space<vmem>>, %arg3: memref<128x128xbf16, #tpu.memory_space<vmem>>, %arg4: memref<128x128xbf16, #tpu.memory_space<vmem>>, %arg5: memref<128x128xbf16, #tpu.memory_space<vmem>>, %arg6: memref<128x128xf32, #tpu.memory_space<vmem>>) attributes {dimension_semantics = [#tpu.dimension_semantics<parallel>], iteration_bounds = array<i64: 2>, scalar_prefetch = 0 : i64, scratch_operands = 0 : i64, tpu.core_type = #tpu.core_type<tc>, window_params = [{transform_indices = @transform_0, window_bounds = array<i64: 128, 128>}, {pipeline_mode = #tpu.pipeline_mode<synchronous>, transform_indices = @transform_1, window_bounds = array<i64: 2, 128>}, {pipeline_mode = #tpu.pipeline_mode<synchronous>, transform_indices = @transform_2, window_bounds = array<i64: 128, 128>}, {pipeline_mode = #tpu.pipeline_mode<synchronous>, transform_indices = @transform_3, window_bounds = array<i64: 128, 128>}, {transform_indices = @transform_4, window_bounds = array<i64: 128, 128>}, {transform_indices = @transform_5, window_bounds = array<i64: 128, 128>}]} {
    %c0 = arith.constant 0 : index
    %c0_0 = arith.constant 0 : index
    %0 = vector.load %arg1[%c0, %c0_0] : memref<128x128xf32, #tpu.memory_space<vmem>>, vector<128x128xf32>
    %c0_1 = arith.constant 0 : index
    %c0_2 = arith.constant 0 : index
    %1 = vector.load %arg2[%c0_1, %c0_2] : memref<2x128xf32, #tpu.memory_space<vmem>>, vector<2x128xf32>
    %2 = vector.extract_strided_slice %1 {offsets = [0, 0], sizes = [1, 128], strides = [1, 1]} : vector<2x128xf32> to vector<1x128xf32>
    %3 = vector.broadcast %2 : vector<1x128xf32> to vector<128x128xf32>
    %4 = arith.mulf %0, %3 : vector<128x128xf32>
    %5 = vector.extract_strided_slice %1 {offsets = [1, 0], sizes = [1, 128], strides = [1, 1]} : vector<2x128xf32> to vector<1x128xf32>
    %6 = vector.broadcast %5 : vector<1x128xf32> to vector<128x128xf32>
    %7 = arith.addf %4, %6 : vector<128x128xf32>
    %cst = arith.constant 0.000000e+00 : f32
    %8 = vector.broadcast %cst : f32 to vector<128x128xf32>
    %9 = arith.maximumf %7, %8 : vector<128x128xf32>
    %10 = arith.truncf %9 : vector<128x128xf32> to vector<128x128xbf16>
    %c0_3 = arith.constant 0 : index
    %c0_4 = arith.constant 0 : index
    %11 = vector.load %arg3[%c0_3, %c0_4] : memref<128x128xbf16, #tpu.memory_space<vmem>>, vector<128x128xbf16>
    %cst_5 = arith.constant dense<0.000000e+00> : vector<128x128xf32>
    %12 = tpu.matmul %10, %11, %cst_5 {dimension_numbers = #tpu.dot_dimension_numbers<[1], [0], [0], [1], [0, 0, 1, 1], [], []>} : vector<128x128xbf16>, vector<128x128xbf16>, vector<128x128xf32> -> vector<128x128xf32>
    %13 = arith.truncf %12 : vector<128x128xf32> to vector<128x128xbf16>
    %c0_6 = arith.constant 0 : index
    %c0_7 = arith.constant 0 : index
    %14 = vector.load %arg5[%c0_6, %c0_7] : memref<128x128xbf16, #tpu.memory_space<vmem>>, vector<128x128xbf16>
    tpu.vector_store %arg5[%c0_6, %c0_7], %13 {strides = array<i32>} : memref<128x128xbf16, #tpu.memory_space<vmem>>, vector<128x128xbf16>,
    %c0_8 = arith.constant 0 : index
    %c0_9 = arith.constant 0 : index
    %15 = vector.load %arg4[%c0_8, %c0_9] : memref<128x128xbf16, #tpu.memory_space<vmem>>, vector<128x128xbf16>
    %cst_10 = arith.constant dense<0.000000e+00> : vector<128x128xf32>
    %16 = tpu.matmul %10, %15, %cst_10 {dimension_numbers = #tpu.dot_dimension_numbers<[1], [0], [0], [1], [0, 0, 1, 1], [], []>} : vector<128x128xbf16>, vector<128x128xbf16>, vector<128x128xf32> -> vector<128x128xf32>
    %c0_11 = arith.constant 0 : index
    %c0_12 = arith.constant 0 : index
    %17 = vector.load %arg6[%c0_11, %c0_12] : memref<128x128xf32, #tpu.memory_space<vmem>>, vector<128x128xf32>
    tpu.vector_store %arg6[%c0_11, %c0_12], %16 {strides = array<i32>} : memref<128x128xf32, #tpu.memory_space<vmem>>, vector<128x128xf32>,
    return
  }
  func.func @transform_0(%arg0: i32) -> (i32, i32) {
    %c0_i32 = arith.constant 0 : i32
    %c0_i32_0 = arith.constant 0 : i32
    return %arg0, %c0_i32 : i32, i32
  }
  func.func @transform_1(%arg0: i32) -> (i32, i32) {
    %c0_i32 = arith.constant 0 : i32
    %c0_i32_0 = arith.constant 0 : i32
    %c0_i32_1 = arith.constant 0 : i32
    return %c0_i32, %c0_i32_0 : i32, i32
  }
  func.func @transform_2(%arg0: i32) -> (i32, i32) {
    %c0_i32 = arith.constant 0 : i32
    %c0_i32_0 = arith.constant 0 : i32
    %c0_i32_1 = arith.constant 0 : i32
    return %c0_i32, %c0_i32_0 : i32, i32
  }
  func.func @transform_3(%arg0: i32) -> (i32, i32) {
    %c0_i32 = arith.constant 0 : i32
    %c0_i32_0 = arith.constant 0 : i32
    %c0_i32_1 = arith.constant 0 : i32
    return %c0_i32, %c0_i32_0 : i32, i32
  }
  func.func @transform_4(%arg0: i32) -> (i32, i32) {
    %c0_i32 = arith.constant 0 : i32
    %c0_i32_0 = arith.constant 0 : i32
    return %arg0, %c0_i32 : i32, i32
  }
  func.func @transform_5(%arg0: i32) -> (i32, i32) {
    %c0_i32 = arith.constant 0 : i32
    %c0_i32_0 = arith.constant 0 : i32
    return %arg0, %c0_i32 : i32, i32
  }
}

module attributes {stable_mosaic.version = 11 : i64} {
  func.func @kernel(%arg0: i32, %arg1: memref<128x128xf32, #tpu.memory_space<vmem>>, %arg2: memref<2x128xf32, #tpu.memory_space<vmem>>, %arg3: memref<128x128xbf16, #tpu.memory_space<vmem>>, %arg4: memref<128x128xbf16, #tpu.memory_space<vmem>>, %arg5: memref<1x128xf32, #tpu.memory_space<vmem>>, %arg6: memref<128x128xbf16, #tpu.memory_space<vmem>>, %arg7: memref<128x128xf32, #tpu.memory_space<vmem>>) attributes {dimension_semantics = [#tpu.dimension_semantics<parallel>], iteration_bounds = array<i64: 2>, scalar_prefetch = 0 : i64, scratch_operands = 0 : i64, tpu.core_type = #tpu.core_type<tc>, window_params = [{transform_indices = @transform_0, window_bounds = array<i64: 128, 128>}, {pipeline_mode = #tpu.pipeline_mode<synchronous>, transform_indices = @transform_1, window_bounds = array<i64: 2, 128>}, {pipeline_mode = #tpu.pipeline_mode<synchronous>, transform_indices = @transform_2, window_bounds = array<i64: 128, 128>}, {pipeline_mode = #tpu.pipeline_mode<synchronous>, transform_indices = @transform_3, window_bounds = array<i64: 128, 128>}, {pipeline_mode = #tpu.pipeline_mode<synchronous>, transform_indices = @transform_4, window_bounds = array<i64: 1, 128>}, {transform_indices = @transform_5, window_bounds = array<i64: 128, 128>}, {transform_indices = @transform_6, window_bounds = array<i64: 128, 128>}]} {
    %c0 = arith.constant 0 : index
    %c0_0 = arith.constant 0 : index
    %0 = vector.load %arg1[%c0, %c0_0] : memref<128x128xf32, #tpu.memory_space<vmem>>, vector<128x128xf32>
    %c0_1 = arith.constant 0 : index
    %c0_2 = arith.constant 0 : index
    %1 = vector.load %arg2[%c0_1, %c0_2] : memref<2x128xf32, #tpu.memory_space<vmem>>, vector<2x128xf32>
    %2 = vector.extract_strided_slice %1 {offsets = [0, 0], sizes = [1, 128], strides = [1, 1]} : vector<2x128xf32> to vector<1x128xf32>
    %3 = vector.broadcast %2 : vector<1x128xf32> to vector<128x128xf32>
    %4 = arith.mulf %0, %3 : vector<128x128xf32>
    %5 = vector.extract_strided_slice %1 {offsets = [1, 0], sizes = [1, 128], strides = [1, 1]} : vector<2x128xf32> to vector<1x128xf32>
    %6 = vector.broadcast %5 : vector<1x128xf32> to vector<128x128xf32>
    %7 = arith.addf %4, %6 : vector<128x128xf32>
    %cst = arith.constant 0.000000e+00 : f32
    %8 = vector.broadcast %cst : f32 to vector<128x128xf32>
    %9 = arith.maximumf %7, %8 : vector<128x128xf32>
    %10 = arith.truncf %9 : vector<128x128xf32> to vector<128x128xbf16>
    %c0_3 = arith.constant 0 : index
    %c0_4 = arith.constant 0 : index
    %11 = vector.load %arg3[%c0_3, %c0_4] : memref<128x128xbf16, #tpu.memory_space<vmem>>, vector<128x128xbf16>
    %cst_5 = arith.constant dense<0.000000e+00> : vector<128x128xf32>
    %12 = tpu.matmul %10, %11, %cst_5 {dimension_numbers = #tpu.dot_dimension_numbers<[1], [0], [0], [1], [0, 0, 1, 1], [], []>} : vector<128x128xbf16>, vector<128x128xbf16>, vector<128x128xf32> -> vector<128x128xf32>
    %13 = arith.truncf %12 : vector<128x128xf32> to vector<128x128xbf16>
    %c0_6 = arith.constant 0 : index
    %c0_7 = arith.constant 0 : index
    %14 = vector.load %arg6[%c0_6, %c0_7] : memref<128x128xbf16, #tpu.memory_space<vmem>>, vector<128x128xbf16>
    tpu.vector_store %arg6[%c0_6, %c0_7], %13 {strides = array<i32>} : memref<128x128xbf16, #tpu.memory_space<vmem>>, vector<128x128xbf16>,
    %c0_8 = arith.constant 0 : index
    %c0_9 = arith.constant 0 : index
    %15 = vector.load %arg4[%c0_8, %c0_9] : memref<128x128xbf16, #tpu.memory_space<vmem>>, vector<128x128xbf16>
    %cst_10 = arith.constant dense<0.000000e+00> : vector<128x128xf32>
    %16 = tpu.matmul %10, %15, %cst_10 {dimension_numbers = #tpu.dot_dimension_numbers<[1], [0], [0], [1], [0, 0, 1, 1], [], []>} : vector<128x128xbf16>, vector<128x128xbf16>, vector<128x128xf32> -> vector<128x128xf32>
    %c0_11 = arith.constant 0 : index
    %c0_12 = arith.constant 0 : index
    %17 = vector.load %arg5[%c0_11, %c0_12] : memref<1x128xf32, #tpu.memory_space<vmem>>, vector<1x128xf32>
    %18 = vector.broadcast %17 : vector<1x128xf32> to vector<128x128xf32>
    %19 = arith.addf %16, %18 : vector<128x128xf32>
    %c0_13 = arith.constant 0 : index
    %c0_14 = arith.constant 0 : index
    %20 = vector.load %arg7[%c0_13, %c0_14] : memref<128x128xf32, #tpu.memory_space<vmem>>, vector<128x128xf32>
    tpu.vector_store %arg7[%c0_13, %c0_14], %19 {strides = array<i32>} : memref<128x128xf32, #tpu.memory_space<vmem>>, vector<128x128xf32>,
    return
  }
  func.func @transform_0(%arg0: i32) -> (i32, i32) {
    %c0_i32 = arith.constant 0 : i32
    %c0_i32_0 = arith.constant 0 : i32
    return %arg0, %c0_i32 : i32, i32
  }
  func.func @transform_1(%arg0: i32) -> (i32, i32) {
    %c0_i32 = arith.constant 0 : i32
    %c0_i32_0 = arith.constant 0 : i32
    %c0_i32_1 = arith.constant 0 : i32
    return %c0_i32, %c0_i32_0 : i32, i32
  }
  func.func @transform_2(%arg0: i32) -> (i32, i32) {
    %c0_i32 = arith.constant 0 : i32
    %c0_i32_0 = arith.constant 0 : i32
    %c0_i32_1 = arith.constant 0 : i32
    return %c0_i32, %c0_i32_0 : i32, i32
  }
  func.func @transform_3(%arg0: i32) -> (i32, i32) {
    %c0_i32 = arith.constant 0 : i32
    %c0_i32_0 = arith.constant 0 : i32
    %c0_i32_1 = arith.constant 0 : i32
    return %c0_i32, %c0_i32_0 : i32, i32
  }
  func.func @transform_4(%arg0: i32) -> (i32, i32) {
    %c0_i32 = arith.constant 0 : i32
    %c0_i32_0 = arith.constant 0 : i32
    %c0_i32_1 = arith.constant 0 : i32
    return %c0_i32, %c0_i32_0 : i32, i32
  }
  func.func @transform_5(%arg0: i32) -> (i32, i32) {
    %c0_i32 = arith.constant 0 : i32
    %c0_i32_0 = arith.constant 0 : i32
    return %arg0, %c0_i32 : i32, i32
  }
  func.func @transform_6(%arg0: i32) -> (i32, i32) {
    %c0_i32 = arith.constant 0 : i32
    %c0_i32_0 = arith.constant 0 : i32
    return %arg0, %c0_i32 : i32, i32
  }
}

module attributes {stable_mosaic.version = 11 : i64} {
  func.func @kernel(%arg0: i32, %arg1: i32, %arg2: memref<128x128xbf16, #tpu.memory_space<vmem>>, %arg3: memref<128x128xbf16, #tpu.memory_space<vmem>>, %arg4: memref<128x128xf32, #tpu.memory_space<vmem>>, %arg5: memref<128x128xf32, #tpu.memory_space<vmem>>, %arg6: memref<128x128xf32, #tpu.memory_space<vmem>>) attributes {dimension_semantics = [#tpu.dimension_semantics<parallel>, #tpu.dimension_semantics<arbitrary>], iteration_bounds = array<i64: 2, 2>, scalar_prefetch = 0 : i64, scratch_operands = 1 : i64, tpu.core_type = #tpu.core_type<tc>, window_params = [{transform_indices = @transform_0, window_bounds = array<i64: 128, 128>}, {transform_indices = @transform_1, window_bounds = array<i64: 128, 128>}, {transform_indices = @transform_2, window_bounds = array<i64: 128, 128>}, {transform_indices = @transform_3, window_bounds = array<i64: 128, 128>}]} {
    %c0_i32 = arith.constant 0 : i32
    %0 = arith.cmpi eq, %arg1, %c0_i32 : i32
    %1 = arith.extui %0 : i1 to i32
    %c0_i32_0 = arith.constant 0 : i32
    %2 = arith.cmpi ne, %1, %c0_i32_0 : i32
    scf.if %2 {
      %cst_9 = arith.constant 0.000000e+00 : f32
      %12 = vector.broadcast %cst_9 : f32 to vector<128x128xf32>
      %c0_10 = arith.constant 0 : index
      %c0_11 = arith.constant 0 : index
      %13 = vector.load %arg6[%c0_10, %c0_11] : memref<128x128xf32, #tpu.memory_space<vmem>>, vector<128x128xf32>
      tpu.vector_store %arg6[%c0_10, %c0_11], %12 {strides = array<i32>} : memref<128x128xf32, #tpu.memory_space<vmem>>, vector<128x128xf32>,
    } else {
    }
    %c0 = arith.constant 0 : index
    %c0_1 = arith.constant 0 : index
    %3 = vector.load %arg6[%c0, %c0_1] : memref<128x128xf32, #tpu.memory_space<vmem>>, vector<128x128xf32>
    %c0_2 = arith.constant 0 : index
    %c0_3 = arith.constant 0 : index
    %4 = vector.load %arg2[%c0_2, %c0_3] : memref<128x128xbf16, #tpu.memory_space<vmem>>, vector<128x128xbf16>
    %c0_4 = arith.constant 0 : index
    %c0_5 = arith.constant 0 : index
    %5 = vector.load %arg3[%c0_4, %c0_5] : memref<128x128xbf16, #tpu.memory_space<vmem>>, vector<128x128xbf16>
    %cst = arith.constant dense<0.000000e+00> : vector<128x128xf32>
    %6 = tpu.matmul %4, %5, %cst {dimension_numbers = #tpu.dot_dimension_numbers<[1], [0], [0], [1], [0, 0, 1, 1], [], []>} : vector<128x128xbf16>, vector<128x128xbf16>, vector<128x128xf32> -> vector<128x128xf32>
    %7 = arith.addf %3, %6 : vector<128x128xf32>
    %c0_6 = arith.constant 0 : index
    %c0_7 = arith.constant 0 : index
    %8 = vector.load %arg6[%c0_6, %c0_7] : memref<128x128xf32, #tpu.memory_space<vmem>>, vector<128x128xf32>
    tpu.vector_store %arg6[%c0_6, %c0_7], %7 {strides = array<i32>} : memref<128x128xf32, #tpu.memory_space<vmem>>, vector<128x128xf32>,
    %c1_i32 = arith.constant 1 : i32
    %9 = arith.cmpi eq, %arg1, %c1_i32 : i32
    %10 = arith.extui %9 : i1 to i32
    %c0_i32_8 = arith.constant 0 : i32
    %11 = arith.cmpi ne, %10, %c0_i32_8 : i32
    scf.if %11 {
      %c0_9 = arith.constant 0 : index
      %c0_10 = arith.constant 0 : index
      %12 = vector.load %arg6[%c0_9, %c0_10] : memref<128x128xf32, #tpu.memory_space<vmem>>, vector<128x128xf32>
      %c0_11 = arith.constant 0 : index
      %c0_12 = arith.constant 0 : index
      %13 = vector.load %arg4[%c0_11, %c0_12] : memref<128x128xf32, #tpu.memory_space<vmem>>, vector<128x128xf32>
      %14 = arith.addf %12, %13 : vector<128x128xf32>
      %c0_13 = arith.constant 0 : index
      %c0_14 = arith.constant 0 : index
      %15 = vector.load %arg5[%c0_13, %c0_14] : memref<128x128xf32, #tpu.memory_space<vmem>>, vector<128x128xf32>
      tpu.vector_store %arg5[%c0_13, %c0_14], %14 {strides = array<i32>} : memref<128x128xf32, #tpu.memory_space<vmem>>, vector<128x128xf32>,
    } else {
    }
    return
  }
  func.func @transform_0(%arg0: i32, %arg1: i32) -> (i32, i32) {
    %c0_i32 = arith.constant 0 : i32
    return %arg0, %arg1 : i32, i32
  }
  func.func @transform_1(%arg0: i32, %arg1: i32) -> (i32, i32) {
    %c0_i32 = arith.constant 0 : i32
    %c0_i32_0 = arith.constant 0 : i32
    return %arg1, %c0_i32 : i32, i32
  }
  func.func @transform_2(%arg0: i32, %arg1: i32) -> (i32, i32) {
    %c0_i32 = arith.constant 0 : i32
    %c0_i32_0 = arith.constant 0 : i32
    return %arg0, %c0_i32 : i32, i32
  }
  func.func @transform_3(%arg0: i32, %arg1: i32) -> (i32, i32) {
    %c0_i32 = arith.constant 0 : i32
    %c0_i32_0 = arith.constant 0 : i32
    return %arg0, %c0_i32 : i32, i32
  }
}

</mosaic_0001>

<bundles_post_ra>
// kernel: gcn_forward.10
= control target key start
LH: loop header
LB: loop body
LE: loop exit
PB: predicated region body
PF: predicated region fallthrough
CT: control target
= control target key end

     0   :  { %s321_s6 = smov 0   ;;  %s398_s0 = inlined_call_operand.vmem [shape: f32[256,128], index: 0, kind: input, shape index: {}]   ;;  %s399_s1 = inlined_call_operand.vmem [shape: f32[2,128], index: 1, kind: output, shape index: {}]  }
   0x1 LB: > { %s283_s7 = sadd.s32 4294967295, %s308_s6   ;;  %p286_p0 = scmp.ge.s32.totalorder %s308_s6, 1  ;;  %s308_s6 = sphi %s321_s6, %s11_s6  }
   0x2   : > { %p83_p1 = scmp.lt.s32.totalorder %s308_s6, 3 }
   0x4   : > { %p84_p2 = pnand %p286_p0, %p83_p1 }
   0x5   : > { %s287_s8 = sshll.u32 (!%p84_p2), %s283_s7, 4  ;;  %p289_p4 = scmp.ne.s32.totalorder (!%p84_p2), %s283_s7, 0 }
   0x6   : > { %87 = sbr.rel (%p84_p2) target bundleno = 77 (0x4d), region = 24  ;;  %p99_p3 = scmp.lt.s32.totalorder (!%p84_p2), %s287_s8, 31 }
   0xb   : > { %s401_s8 = smov (!%p99_p3, %s287_s8), 31  ;;  %107 = sbr.rel (%p289_p4) target bundleno = 18 (0x12), region = 28 }
   0xc   : > { %s288_s9 = sshll.u32 %s401_s8, 3 }
   0xd   : > { %s332_s12 = scalar_lea.vmem %s398_s0, %s288_s9 }
  0x10   : > { %v310_v0 = vmov 0.0  }
  0x11   : > { %108 = vst [vmem:[%s399_s1] sm:$0x3] %v310_v0 }
  0x12 PF: > { %v125_v1 = vlaneseq  ;;  %s290_s15 = sshll.u32 %s283_s7, 7  ;;  %v109_v11 = vld [vmem:[%s332_s12] sm:$0xff]  ;;  %v110_v12 = vld [vmem:[%s332_s12 + $0x8] sm:$0xff]  ;;  %v111_v15 = vld [vmem:[%s332_s12 + $0x10] sm:$0xff] }
  0x13   : > { %v340_v4 = vstv %s290_s15  ;;  %v112_v20 = vld [vmem:[%s332_s12 + $0x18] sm:$0xff]  ;;  %v113_v26 = vld [vmem:[%s332_s12 + $0x20] sm:$0xff]  ;;  %v114_v32 = vld [vmem:[%s332_s12 + $0x28] sm:$0xff] }
  0x14   : > { %v337_v2 = vshrl.u32 %v125_v1, 7  ;;  %v115_v39 = vld [vmem:[%s332_s12 + $0x30] sm:$0xff]  ;;  %v116_v46 = vld [vmem:[%s332_s12 + $0x38] sm:$0xff]  ;;  %v117_v53 = vld [vmem:[%s332_s12 + $0x40] sm:$0xff] }
  0x15   : > { %v118_v60 = vld [vmem:[%s332_s12 + $0x48] sm:$0xff] }
  0x16   : > { %v127_v3 = vadd.s32 8, %v337_v2  ;;  %v128_v5 = vadd.s32 16, %v337_v2  ;;  %v129_v6 = vadd.s32 24, %v337_v2  ;;  %v144_v7 = vadd.s32 %v340_v4, %v337_v2 }
  0x17   : > { %v130_v9 = vadd.s32 32, %v337_v2  ;;  %v131_v13 = vadd.s32 40, %v337_v2  ;;  %v132_v16 = vadd.s32 48, %v337_v2  ;;  %v133_v21 = vadd.s32 56, %v337_v2 }
  0x18   : > { %v145_v8 = vadd.s32 %v340_v4, %v127_v3  ;;  %v146_v10 = vadd.s32 %v340_v4, %v128_v5  ;;  %v147_v14 = vadd.s32 %v340_v4, %v129_v6  ;;  %vm160_vm0 = vcmp.lt.s32.totalorder %v144_v7, 256  ;;  %v119_v5 = vld [vmem:[%s332_s12 + $0x50] sm:$0xff] }
  0x19   : > { %v148_v17 = vadd.s32 %v340_v4, %v130_v9  ;;  %v176_v18 = vsel %vm160_vm0, %v109_v11, 0.0  ;;  %v149_v22 = vadd.s32 %v340_v4, %v131_v13  ;;  %v134_v23 = vadd.s32 64, %v337_v2 }
  0x1a   : > { %vm161_vm1 = vcmp.lt.s32.totalorder %v145_v8, 256  ;;  %vm162_vm2 = vcmp.lt.s32.totalorder %v146_v10, 256  ;;  %vm163_vm3 = vcmp.lt.s32.totalorder %v147_v14, 256  ;;  %v150_v27 = vadd.s32 %v340_v4, %v132_v16 }
  0x1b   : > { %v177_v19 = vsel %vm161_vm1, %v110_v12, 0.0  ;;  %v178_v24 = vsel %vm162_vm2, %v111_v15, 0.0  ;;  %vm164_vm4 = vcmp.lt.s32.totalorder %v148_v17, 256  ;;  %v213_v28 = vmul.f32 %v176_v18, %v176_v18  ;;  %v120_v12 = vld [vmem:[%s332_s12 + $0x58] sm:$0xff] }
  0x1c   : > { %v192_v25 = vadd.f32 %v177_v19, %v176_v18  ;;  %v214_v29 = vmul.f32 %v177_v19, %v177_v19  ;;  %v179_v30 = vsel %vm163_vm3, %v112_v20, 0.0  ;;  %v135_v33 = vadd.s32 72, %v337_v2  ;;  %v121_v18 = vld [vmem:[%s332_s12 + $0x60] sm:$0xff] }
  0x1d   : > { %v151_v34 = vadd.s32 %v340_v4, %v133_v21  ;;  %vm165_vm5 = vcmp.lt.s32.totalorder %v149_v22, 256  ;;  %v215_v35 = vmul.f32 %v178_v24, %v178_v24  ;;  %v136_v36 = vadd.s32 80, %v337_v2 }
  0x1e   : > { %v193_v31 = vadd.f32 %v192_v25, %v178_v24  ;;  %v180_v37 = vsel %vm164_vm4, %v113_v26, 0.0  ;;  %v152_v40 = vadd.s32 %v340_v4, %v134_v23  ;;  %vm166_vm6 = vcmp.lt.s32.totalorder %v150_v27, 256  ;;  %v122_v23 = vld [vmem:[%s332_s12 + $0x68] sm:$0xff] }
  0x1f   : > { %v216_v41 = vmul.f32 %v179_v30, %v179_v30  ;;  %v229_v42 = vadd.f32 %v214_v29, %v213_v28  ;;  %v137_v43 = vadd.s32 88, %v337_v2  ;;  %v181_v44 = vsel %vm165_vm5, %v114_v32, 0.0  ;;  %v123_v29 = vld [vmem:[%s332_s12 + $0x70] sm:$0xff] }
  0x20   : > { %v194_v38 = vadd.f32 %v193_v31, %v179_v30  ;;  %v153_v47 = vadd.s32 %v340_v4, %v135_v33  ;;  %vm167_vm7 = vcmp.lt.s32.totalorder %v151_v34, 256  ;;  %v217_v48 = vmul.f32 %v180_v37, %v180_v37  ;;  %v124_v34 = vld [vmem:[%s332_s12 + $0x78] sm:$0xff] }
  0x21   : > { %v230_v49 = vadd.f32 %v229_v42, %v215_v35  ;;  %v138_v50 = vadd.s32 96, %v337_v2  ;;  %v182_v51 = vsel %vm166_vm6, %v115_v39, 0.0  ;;  %v154_v54 = vadd.s32 %v340_v4, %v136_v36 }
  0x22   : > { %v195_v45 = vadd.f32 %v194_v38, %v180_v37  ;;  %vm168_vm8 = vcmp.lt.s32.totalorder %v152_v40, 256  ;;  %v218_v55 = vmul.f32 %v181_v44, %v181_v44  ;;  %v139_v57 = vadd.s32 104, %v337_v2 }
  0x23   : > { %v231_v56 = vadd.f32 %v230_v49, %v216_v41  ;;  %v183_v58 = vsel %vm167_vm7, %v116_v46, 0.0  ;;  %v155_v61 = vadd.s32 %v340_v4, %v137_v43  ;;  %vm169_vm9 = vcmp.lt.s32.totalorder %v153_v47, 256 }
  0x24   : > { %v196_v52 = vadd.f32 %v195_v45, %v181_v44  ;;  %v219_v62 = vmul.f32 %v182_v51, %v182_v51  ;;  %v140_v0 = vadd.s32 112, %v337_v2  ;;  %v184_v1 = vsel %vm168_vm8, %v117_v53, 0.0 }
  0x25   : > { %v232_v63 = vadd.f32 %v231_v56, %v217_v48  ;;  %v156_v6 = vadd.s32 %v340_v4, %v138_v50  ;;  %vm170_vm10 = vcmp.lt.s32.totalorder %v154_v54, 256  ;;  %v220_v7 = vmul.f32 %v183_v58, %v183_v58 }
  0x26   : > { %v197_v59 = vadd.f32 %v196_v52, %v182_v51  ;;  %v141_v9 = vadd.s32 120, %v337_v2  ;;  %v185_v10 = vsel %vm169_vm9, %v118_v60, 0.0  ;;  %v157_v13 = vadd.s32 %v340_v4, %v139_v57 }
  0x27   : > { %v233_v8 = vadd.f32 %v232_v63, %v218_v55  ;;  %vm171_vm11 = vcmp.lt.s32.totalorder %v155_v61, 256  ;;  %v221_v14 = vmul.f32 %v184_v1, %v184_v1  ;;  %v186_v16 = vsel %vm170_vm10, %v119_v5, 0.0  ;;  %v250_v61 = vld [vmem:[%s399_s1] sm:$0x3] }
  0x28   : > { %v198_v3 = vadd.f32 %v197_v59, %v183_v58  ;;  %v158_v19 = vadd.s32 %v340_v4, %v140_v0  ;;  %vm172_vm12 = vcmp.lt.s32.totalorder %v156_v6, 256  ;;  %v222_v20 = vmul.f32 %v185_v10, %v185_v10 }
  0x29   : > { %v234_v15 = vadd.f32 %v233_v8, %v219_v62  ;;  %v187_v2 = vsel %vm171_vm11, %v120_v12, 0.0  ;;  %v159_v24 = vadd.s32 %v340_v4, %v141_v9  ;;  %vm173_vm13 = vcmp.lt.s32.totalorder %v157_v13, 256 }
  0x2a   : > { %v199_v11 = vadd.f32 %v198_v3, %v184_v1  ;;  %v223_v25 = vmul.f32 %v186_v16, %v186_v16  ;;  %v188_v27 = vsel %vm172_vm12, %v121_v18, 0.0  ;;  %vm174_vm14 = vcmp.lt.s32.totalorder %v158_v19, 256 }
  0x2b   : > { %v235_v21 = vadd.f32 %v234_v15, %v220_v7  ;;  %v224_v30 = vmul.f32 %v187_v2, %v187_v2  ;;  %v189_v32 = vsel %vm173_vm13, %v122_v23, 0.0  ;;  %vm175_vm15 = vcmp.lt.s32.totalorder %v159_v24, 256 }
  0x2c   : > { %v200_v17 = vadd.f32 %v199_v11, %v185_v10  ;;  %v225_v35 = vmul.f32 %v188_v27, %v188_v27  ;;  %v190_v37 = vsel %vm174_vm14, %v123_v29, 0.0  ;;  %v226_v39 = vmul.f32 %v189_v32, %v189_v32 }
  0x2d   : > { %v236_v26 = vadd.f32 %v235_v21, %v221_v14  ;;  %v191_v4 = vsel %vm175_vm15, %v124_v34, 0.0  ;;  %v227_v42 = vmul.f32 %v190_v37, %v190_v37  ;;  %vm251_vm0 = vcmask 1040384  }
  0x2e   : > { %v201_v22 = vadd.f32 %v200_v17, %v186_v16  ;;  %v228_v45 = vmul.f32 %v191_v4, %v191_v4 }
  0x2f   : > { %v237_v31 = vadd.f32 %v236_v26, %v222_v20 }
  0x30   : > { %v202_v28 = vadd.f32 %v201_v22, %v187_v2 }
  0x31   : > { %v238_v36 = vadd.f32 %v237_v31, %v223_v25 }
  0x32   : > { %v203_v33 = vadd.f32 %v202_v28, %v188_v27 }
  0x33   : > { %v239_v40 = vadd.f32 %v238_v36, %v224_v30 }
  0x34   : > { %v204_v38 = vadd.f32 %v203_v33, %v189_v32 }
  0x35   : > { %v240_v43 = vadd.f32 %v239_v40, %v225_v35 }
  0x36   : > { %v205_v41 = vadd.f32 %v204_v38, %v190_v37 }
  0x37   : > { %v241_v46 = vadd.f32 %v240_v43, %v226_v39 }
  0x38   : > { %v206_v44 = vadd.f32 %v205_v41, %v191_v4 }
  0x39   : > { %v242_v48 = vadd.f32 %v241_v46, %v227_v42 }
  0x3a   : > { %v207_v47 = vrot.slane %v206_v44, 4 }
  0x3b   : > { %v243_v50 = vadd.f32 %v242_v48, %v228_v45 }
  0x3c   : > { %v208_v49 = vadd.f32 %v207_v47, %v206_v44 }
  0x3d   : > { %v244_v52 = vrot.slane %v243_v50, 4 }
  0x3e   : > { %v209_v51 = vrot.slane %v208_v49, 2 }
  0x3f   : > { %v245_v54 = vadd.f32 %v244_v52, %v243_v50 }
  0x40   : > { %v210_v53 = vadd.f32 %v209_v51, %v208_v49 }
  0x41   : > { %v246_v56 = vrot.slane %v245_v54, 2 }
  0x42   : > { %v211_v55 = vrot.slane %v210_v53, 1 }
  0x43   : > { %v247_v57 = vadd.f32 %v246_v56, %v245_v54 }
  0x44   : > { %v212_v58 = vadd.f32 %v211_v55, %v210_v53 }
  0x45   : > { %v248_v59 = vrot.slane %v247_v57, 1 }
  0x47   : > { %v249_v60 = vadd.f32 %v248_v59, %v247_v57 }
  0x49   : > { %v252_v62 = vsel %vm251_vm0, %v212_v58, %v249_v60 }
  0x4a   : > { %v253_v63 = vadd.f32 %v252_v62, %v250_v61 }
  0x4c   : > { %254 = vst [vmem:[%s399_s1] sm:$0x3] %v253_v63 }
  0x4d PF: > { %s11_s6 = sadd.s32 1, %s308_s6  }
  0x4e   : > { %p8_p5 = scmp.ge.s32.totalorder %s11_s6, 4  }
  0x50   :  { %10 = sbr.rel (!%p8_p5) target bundleno = 1 (0x1), region = 54 }

// kernel: gcn_forward.8
= control target key start
LH: loop header
LB: loop body
LE: loop exit
PB: predicated region body
PF: predicated region fallthrough
CT: control target
= control target key end

     0   :  { %10 = vsyncpa [#allocation3], 0  ;;  %s1233_s0 = inlined_call_operand.hbm [shape: f32[256,128], index: 0, kind: input, shape index: {}]   ;;  %s1234_s1 = inlined_call_operand.hbm [shape: bf16[128,128], index: 1, kind: input, shape index: {}]   ;;  %s1235_s2 = inlined_call_operand.hbm [shape: bf16[128,128], index: 2, kind: input, shape index: {}]   ;;  %s1236_s3 = inlined_call_operand.vmem [shape: bf16[256,128], index: 3, kind: output, shape index: {0}]   ;;  %s1237_s4 = inlined_call_operand.vmem [shape: f32[256,128], index: 4, kind: output, shape index: {1}]  }
   0x1   :  { %12 = vsyncpa [#allocation3 + $0x1], 0 }
   0x2   :  { %13 = vsyncpa [#allocation5], 0  ;;  %s1075_s15 = smov 0   ;;  %s1077_s16 = smov 0  }
   0x3   :  { %s1079_s17 = smov 0   ;;  %s1081_s18 = smov 0  }
   0x4 LB: > { %s687_s19 = sadd.s32 4294967295, %s1042_s18   ;;  %p39_p0 = scmp.ne.s32.totalorder %s1034_s16, %s1030_s15  ;;  %s1042_s18 = sphi %s1081_s18, %s1245_s18   ;;  %s1038_s17 = sphi %s1079_s17, %s1244_s17   ;;  %s1034_s16 = sphi %s1077_s16, %s1243_s16   ;;  %s1030_s15 = sphi %s1075_s15, %s1242_s15  }
   0x5   : > { %p1097_p1 = scmp.eq.s32.totalorder %s687_s19, 0  ;;  %p689_p2 = scmp.ge.s32.totalorder %s1042_s18, 1 }
   0x6   : > { %p144_p3 = scmp.lt.s32.totalorder %s1042_s18, 3  ;;  %s155_s24 = sshll.u32 %s1234_s1, 4  ;;  %s156_s24 = int_to_ptr.hbm [resolvable:$true] %s155_s24 }
   0x7   : > { %p1105_p4 = por %p1097_p1, %p39_p0  ;;  %s1044_s26 = smov [#allocation4]  }
   0x8   : > { %p1112_p5 = pnand %p689_p2, %p144_p3  ;;  %s157_s27 = sshll.u32 %s1044_s26, 4  ;;  %s158_s27 = int_to_ptr.vmem [resolvable:$true] %s157_s27 }
   0x9   : > { %s169_s30 = sshll.u32 %s1235_s2, 4  ;;  %s1045_s5 = smov 64   ;;  %s170_s30 = int_to_ptr.hbm [resolvable:$true] %s169_s30 }
   0xa   : > { %p860_p6 = pneg %p1112_p5  ;;  %s1046_s6 = smov 4  }
   0xb   : > { %s1047_s7 = smov [#allocation6]   ;;  %s1124_s9 = sadd.s32 1, %s1042_s18  }
   0xc   : > { %p861_p7 = pnand %p860_p6, %p1097_p1  ;;  %s171_s8 = sshll.u32 %s1047_s7, 4  ;;  %s172_s8 = int_to_ptr.vmem [resolvable:$true] %s171_s8 }
   0xd   : > { %s26_s10 = sadd.s32 1, %s1038_s17  ;;  %s23_s11 = ssub.s32 %s1042_s18, %s1124_s9 }
   0xe   : > { %863 = dma.hbm_to_vmem [thread:$0]  (!%p861_p7), %s156_s24, 1024, %s158_s27, [#allocation5], %s1045_s5, %s1045_s5, %s1046_s6  }
   0xf   : > { %866 = dma.hbm_to_vmem [thread:$0]  (!%p861_p7), %s170_s30, 1024, %s172_s8, [#allocation5], %s1045_s5, %s1045_s5, %s1046_s6  }
  0x10   : > { %p33_p8 = scmp.ne.s32.totalorder %s1038_s17, %s1034_s16  ;;  %p24_p9 = scmp.eq.s32.totalorder %s23_s11, 0 }
  0x11   : > { %p34_p10 = scmp.eq.s32.totalorder %s1042_s18, 0  ;;  %p873_p11 = scmp.lt.s32.totalorder %s1042_s18, 2 }
  0x12   : > { %s185_s12 = sand.u32 1, %s1038_s17   ;;  %s770_s15 = sshll.u32 %s1042_s18, 7 }
  0x13   : > { %s1135_s13 = scalar_select %p24_p9, %s1038_s17, %s26_s10  }
  0x14   : > { %p35_p12 = por %p34_p10, %p33_p8  ;;  %s693_s14 = sshll.u32 %s185_s12, 7 }
  0x15   : > { %s194_s24 = scalar_lea.hbm %s1233_s0, %s770_s15  ;;  %s189_s27 = scalar_lea.vmem [#allocation2], %s693_s14 }
  0x16   : > { %s195_s26 = sshll.u32 %s194_s24, 4  ;;  %s197_s28 = sshll.u32 %s189_s27, 4  ;;  %s196_s26 = int_to_ptr.hbm [resolvable:$true] %s195_s26  ;;  %s198_s28 = int_to_ptr.vmem [resolvable:$true] %s197_s28 }
  0x17   : > { %p1141_p13 = pnand %p873_p11, %p35_p12  ;;  %s186_s30 = scalar_lea.sflag [#allocation3], %s185_s12 }
  0x18   : > { %s974_s5 = sshra.s32 %s196_s26, 4  ;;  %s981_s10 = scalar_lea.hbm %s1233_s0, 256  ;;  %s975_s5 = int_to_ptr.hbm [resolvable:$true] %s974_s5 }
  0x19   : > { %s976_s6 = scalar_lea.hbm %s975_s5, 128  ;;  %p978_p2 = pneg %p1141_p13 }
  0x1a   : > { %p977_p0 = scmp.ne.s32.totalorder %s975_s5, %s976_s6  ;;  %p982_p7 = scmp.lt.s32.totalorder %s975_s5, %s1233_s0 }
  0x1b   : > { %p983_p8 = scmp.lt.s32.totalorder %s981_s10, %s976_s6 }
  0x1c   : > { %p979_p3 = pnand %p978_p2, %p977_p0 }
  0x1d   : > { %p984_p9 = por %p983_p8, %p982_p7 }
  0x1e   : > { %p980_p6 = pneg %p979_p3 }
  0x20   : > { %p985_p10 = pnand %p984_p9, %p980_p6 }
  0x22   : > { %988 = shalt.err (!%p985_p10)
}
  0x23   : > { %s1048_s12 = smov 128   ;;  %s1049_s15 = smov 8  }
  0x24   : > { %870 = dma.hbm_to_vmem [thread:$0]  (!%p1141_p13), %s196_s26, 2048, %s198_s28, %s186_s30, %s1048_s12, %s1048_s12, %s1049_s15  }
  0x25   : > { %209 = sbr.rel (%p1112_p5) target bundleno = 268 (0x10c), region = 32  ;;  %s211_s22 = sand.u32 (!%p1112_p5), 1, %s1034_s16  }
  0x26   : > { %s697_s23 = sshll.u32 (!%p1112_p5), %s211_s22, 7  ;;  %s212_s24 = scalar_lea.sflag (!%p1112_p5), [#allocation3], %s211_s22 }
  0x27   : > { %s1158_s27 = scalar_lea.vmem (!%p1112_p5), [#allocation2], %s697_s23 }
  0x2a   : > { %1021 = dma.done.wait (%p1105_p4), %s212_s24, 2048  }
  0x2b   : > { %1023 = vsyncadd (%p1105_p4), %s212_s24, 4294965248 }
  0x2c   : > { %1025 = dma.done.wait (%p1097_p1), [#allocation5], 2048  }
  0x2d   : > { %1027 = vsyncadd (%p1097_p1), [#allocation5], 4294965248  ;;  %v778_v0 = vld [vmem:[#allocation4 + $0x38] sm:$0xff]  ;;  %v777_v2 = vld [vmem:[#allocation4 + $0x30] sm:$0xff]  ;;  %s700_s20 = sshll.u32 %s687_s19, 4 }
  0x2e   : > { %v786_v1 = vld [vmem:[#allocation6 + $0x38] sm:$0xff]  ;;  %357 = vmatpush.bf16.msra.mxu0 %v778_v0  ;;  %834 = vmatpush.bf16.msra.mxu2 %v778_v0  ;;  %v785_v3 = vld [vmem:[#allocation6 + $0x30] sm:$0xff]  ;;  %v776_v4 = vld [vmem:[#allocation4 + $0x28] sm:$0xff]  ;;  %p258_p1 = scmp.lt.s32.totalorder %s700_s20, 31 }
  0x2f   : > { %502 = vmatpush.bf16.msra.mxu1 %v786_v1  ;;  %842 = vmatpush.bf16.msra.mxu3 %v786_v1  ;;  %v784_v5 = vld [vmem:[#allocation6 + $0x28] sm:$0xff]  ;;  %v775_v6 = vld [vmem:[#allocation4 + $0x20] sm:$0xff]  ;;  %v774_v8 = vld [vmem:[#allocation4 + $0x18] sm:$0xff] }
  0x30   : > { %v783_v7 = vld [vmem:[#allocation6 + $0x20] sm:$0xff]  ;;  %v782_v9 = vld [vmem:[#allocation6 + $0x18] sm:$0xff]  ;;  %v773_v10 = vld [vmem:[#allocation4 + $0x10] sm:$0xff]  ;;  %s1247_s20 = smov (!%p258_p1, %s700_s20), 31 }
  0x31   : > { %v781_v11 = vld [vmem:[#allocation6 + $0x10] sm:$0xff]  ;;  %v772_v12 = vld [vmem:[#allocation4 + $0x8] sm:$0xff]  ;;  %v771_v14 = vld [vmem:[#allocation4] sm:$0xff]  ;;  %s703_s21 = sshll.u32 %s1247_s20, 3  ;;  %s701_s29 = sshll.u32 %s1247_s20, 2 }
  0x32   : > { %358 = vmatpush.bf16.msra.mxu0 %v777_v2  ;;  %835 = vmatpush.bf16.msra.mxu2 %v777_v2  ;;  %v780_v13 = vld [vmem:[#allocation6 + $0x8] sm:$0xff]  ;;  %v269_v15 = vld [vmem:[%s1158_s27] sm:$0xff]  ;;  %v271_v22 = vld [vmem:[%s1158_s27 + $0x10] sm:$0xff]  ;;  %s1189_s28 = scalar_lea.vmem %s1237_s4, %s703_s21  ;;  %s1196_s30 = scalar_lea.vmem %s1236_s3, %s701_s29 }
  0x33   : > { %503 = vmatpush.bf16.msra.mxu1 %v785_v3  ;;  %843 = vmatpush.bf16.msra.mxu3 %v785_v3  ;;  %v270_v16 = vld [vmem:[%s1158_s27 + $0x8] sm:$0xff]  ;;  %v277_v17 = vld [vmem:[%s1158_s27 + $0x40] sm:$0xff]  ;;  %v272_v23 = vld [vmem:[%s1158_s27 + $0x18] sm:$0xff] }
  0x34   : > { %v278_v18 = vld [vmem:[%s1158_s27 + $0x48] sm:$0xff]  ;;  %v779_v19 = vld [vmem:[#allocation6] sm:$0xff]  ;;  %v285_v20 = vpack.c.bf16 %v270_v16, %v269_v15  ;;  %v279_v24 = vld [vmem:[%s1158_s27 + $0x50] sm:$0xff]  ;;  %v286_v26 = vpack.c.bf16 %v272_v23, %v271_v22 }
  0x35   : > { %v289_v21 = vpack.c.bf16 %v278_v18, %v277_v17  ;;  %v280_v25 = vld [vmem:[%s1158_s27 + $0x58] sm:$0xff]  ;;  %v273_v28 = vld [vmem:[%s1158_s27 + $0x20] sm:$0xff]  ;;  %v274_v29 = vld [vmem:[%s1158_s27 + $0x28] sm:$0xff] }
  0x36   : > { %359 = vmatpush.bf16.msra.mxu0 %v776_v4  ;;  %836 = vmatpush.bf16.msra.mxu2 %v776_v4  ;;  %v290_v27 = vpack.c.bf16 %v280_v25, %v279_v24  ;;  %v281_v30 = vld [vmem:[%s1158_s27 + $0x60] sm:$0xff]  ;;  %v282_v31 = vld [vmem:[%s1158_s27 + $0x68] sm:$0xff]  ;;  %v287_v32 = vpack.c.bf16 %v274_v29, %v273_v28  ;;  %v275_v34 = vld [vmem:[%s1158_s27 + $0x30] sm:$0xff] }
  0x37   : > { %504 = vmatpush.bf16.msra.mxu1 %v784_v5  ;;  %844 = vmatpush.bf16.msra.mxu3 %v784_v5  ;;  %v291_v33 = vpack.c.bf16 %v282_v31, %v281_v30  ;;  %v276_v35 = vld [vmem:[%s1158_s27 + $0x38] sm:$0xff]  ;;  %v283_v36 = vld [vmem:[%s1158_s27 + $0x70] sm:$0xff] }
  0x38   : > { %v284_v37 = vld [vmem:[%s1158_s27 + $0x78] sm:$0xff]  ;;  %v288_v38 = vpack.c.bf16 %v276_v35, %v275_v34 }
  0x39   : > { %v292_v39 = vpack.c.bf16 %v284_v37, %v283_v36 }
  0x3a   : > { %360 = vmatpush.bf16.msra.mxu0 %v775_v6  ;;  %837 = vmatpush.bf16.msra.mxu2 %v775_v6 }
  0x3b   : > { %505 = vmatpush.bf16.msra.mxu1 %v783_v7  ;;  %845 = vmatpush.bf16.msra.mxu3 %v783_v7 }
  0x3e   : > { %361 = vmatpush.bf16.msra.mxu0 %v774_v8  ;;  %838 = vmatpush.bf16.msra.mxu2 %v774_v8 }
  0x3f   : > { %506 = vmatpush.bf16.msra.mxu1 %v782_v9  ;;  %846 = vmatpush.bf16.msra.mxu3 %v782_v9 }
  0x42   : > { %362 = vmatpush.bf16.msra.mxu0 %v773_v10  ;;  %839 = vmatpush.bf16.msra.mxu2 %v773_v10 }
  0x43   : > { %507 = vmatpush.bf16.msra.mxu1 %v781_v11  ;;  %847 = vmatpush.bf16.msra.mxu3 %v781_v11 }
  0x46   : > { %363 = vmatpush.bf16.msra.mxu0 %v772_v12  ;;  %840 = vmatpush.bf16.msra.mxu2 %v772_v12 }
  0x47   : > { %508 = vmatpush.bf16.msra.mxu1 %v780_v13  ;;  %848 = vmatpush.bf16.msra.mxu3 %v780_v13 }
  0x4a   : > { %364 = vmatpush.bf16.msra.mxu0 %v771_v14  ;;  %841 = vmatpush.bf16.msra.mxu2 %v771_v14 }
  0x4b   : > { %509 = vmatpush.bf16.msra.mxu1 %v779_v19  ;;  %849 = vmatpush.bf16.msra.mxu3 %v779_v19 }
  0x4d   : > { %365 = vmatmul.bf16.vlgmr.msra.gmra.mxu0 %v285_v20  ;;  %385 = vmatmul.bf16.vlgmr.msra.gmra.mxu2 %v289_v21 }
  0x4e   : > { %510 = vmatmul.bf16.vlgmr.msra.gmra.mxu1 %v285_v20  ;;  %530 = vmatmul.bf16.vlgmr.msra.gmra.mxu3 %v289_v21 }
  0x5d   : > { %370 = vmatmul.bf16.gmra.mxu0 %v286_v26  ;;  %390 = vmatmul.bf16.gmra.mxu2 %v290_v27 }
  0x5e   : > { %515 = vmatmul.bf16.gmra.mxu1 %v286_v26  ;;  %535 = vmatmul.bf16.gmra.mxu3 %v290_v27 }
  0x6d   : > { %375 = vmatmul.bf16.gmra.mxu0 %v287_v32  ;;  %395 = vmatmul.bf16.gmra.mxu2 %v291_v33 }
  0x6e   : > { %520 = vmatmul.bf16.gmra.mxu1 %v287_v32  ;;  %540 = vmatmul.bf16.gmra.mxu3 %v291_v33 }
  0x7d   : > { %380 = vmatmul.bf16.gmra.mxu0 %v288_v38  ;;  %400 = vmatmul.bf16.gmra.mxu2 %v292_v39 }
  0x7e   : > { %525 = vmatmul.bf16.gmra.mxu1 %v288_v38  ;;  %545 = vmatmul.bf16.gmra.mxu3 %v292_v39 }
  0xca   : > { %v366_v40 = vpop.f32.mrf.mxu0 }
  0xcb   : > { %v511_v41 = vpop.f32.mrf.mxu1 }
  0xcc   : > { %551 = vst [vmem:[%s1189_s28] sm:$0xff] %v511_v41 }
  0xd0   : > { %v386_v42 = vpop.f32.mrf.mxu2 }
  0xd1   : > { %v531_v43 = vpop.f32.mrf.mxu3 }
  0xd2   : > { %559 = vst [vmem:[%s1189_s28 + $0x40] sm:$0xff] %v531_v43  ;;  %v368_v44 = vpop.f32.mrf.mxu0 }
  0xd3   : > { %v790_v45 = vpack.c.bf16 %v368_v44, %v366_v40  ;;  %v513_v46 = vpop.f32.mrf.mxu1 }
  0xd4   : > { %552 = vst [vmem:[%s1189_s28 + $0x8] sm:$0xff] %v513_v46 }
  0xd5   : > { %791 = vst [vmem:[%s1196_s30] sm:$0xff] %v790_v45  }
  0xd8   : > { %v388_v47 = vpop.f32.mrf.mxu2 }
  0xd9   : > { %v810_v48 = vpack.c.bf16 %v388_v47, %v386_v42  ;;  %v533_v49 = vpop.f32.mrf.mxu3 }
  0xda   : > { %560 = vst [vmem:[%s1189_s28 + $0x48] sm:$0xff] %v533_v49  ;;  %v371_v50 = vpop.f32.mrf.mxu0 }
  0xdb   : > { %830 = vst [vmem:[%s1196_s30 + $0x20] sm:$0xff] %v810_v48   ;;  %v516_v51 = vpop.f32.mrf.mxu1 }
  0xdc   : > { %553 = vst [vmem:[%s1189_s28 + $0x10] sm:$0xff] %v516_v51 }
  0xe0   : > { %v391_v52 = vpop.f32.mrf.mxu2 }
  0xe1   : > { %v536_v53 = vpop.f32.mrf.mxu3 }
  0xe2   : > { %561 = vst [vmem:[%s1189_s28 + $0x50] sm:$0xff] %v536_v53  ;;  %v373_v54 = vpop.f32.mrf.mxu0 }
  0xe3   : > { %v795_v55 = vpack.c.bf16 %v373_v54, %v371_v50  ;;  %v518_v56 = vpop.f32.mrf.mxu1 }
  0xe4   : > { %554 = vst [vmem:[%s1189_s28 + $0x18] sm:$0xff] %v518_v56 }
  0xe5   : > { %827 = vst [vmem:[%s1196_s30 + $0x8] sm:$0xff] %v795_v55  }
  0xe8   : > { %v393_v57 = vpop.f32.mrf.mxu2 }
  0xe9   : > { %v815_v58 = vpack.c.bf16 %v393_v57, %v391_v52  ;;  %v538_v59 = vpop.f32.mrf.mxu3 }
  0xea   : > { %562 = vst [vmem:[%s1189_s28 + $0x58] sm:$0xff] %v538_v59  ;;  %v376_v60 = vpop.f32.mrf.mxu0 }
  0xeb   : > { %831 = vst [vmem:[%s1196_s30 + $0x28] sm:$0xff] %v815_v58   ;;  %v521_v61 = vpop.f32.mrf.mxu1 }
  0xec   : > { %555 = vst [vmem:[%s1189_s28 + $0x20] sm:$0xff] %v521_v61 }
  0xf0   : > { %v396_v62 = vpop.f32.mrf.mxu2 }
  0xf1   : > { %v541_v63 = vpop.f32.mrf.mxu3 }
  0xf2   : > { %563 = vst [vmem:[%s1189_s28 + $0x60] sm:$0xff] %v541_v63  ;;  %v378_v0 = vpop.f32.mrf.mxu0 }
  0xf3   : > { %v800_v1 = vpack.c.bf16 %v378_v0, %v376_v60  ;;  %v523_v2 = vpop.f32.mrf.mxu1 }
  0xf4   : > { %556 = vst [vmem:[%s1189_s28 + $0x28] sm:$0xff] %v523_v2 }
  0xf5   : > { %828 = vst [vmem:[%s1196_s30 + $0x10] sm:$0xff] %v800_v1  }
  0xf8   : > { %v398_v3 = vpop.f32.mrf.mxu2 }
  0xf9   : > { %v820_v4 = vpack.c.bf16 %v398_v3, %v396_v62  ;;  %v543_v5 = vpop.f32.mrf.mxu3 }
  0xfa   : > { %564 = vst [vmem:[%s1189_s28 + $0x68] sm:$0xff] %v543_v5  ;;  %v381_v6 = vpop.f32.mrf.mxu0 }
  0xfb   : > { %832 = vst [vmem:[%s1196_s30 + $0x30] sm:$0xff] %v820_v4   ;;  %v526_v7 = vpop.f32.mrf.mxu1 }
  0xfc   : > { %557 = vst [vmem:[%s1189_s28 + $0x30] sm:$0xff] %v526_v7 }
 0x100   : > { %v401_v8 = vpop.f32.mrf.mxu2 }
 0x101   : > { %v546_v9 = vpop.f32.mrf.mxu3 }
 0x102   : > { %565 = vst [vmem:[%s1189_s28 + $0x70] sm:$0xff] %v546_v9  ;;  %v383_v10 = vpop.f32.mrf.mxu0 }
 0x103   : > { %v805_v11 = vpack.c.bf16 %v383_v10, %v381_v6  ;;  %v528_v12 = vpop.f32.mrf.mxu1 }
 0x104   : > { %558 = vst [vmem:[%s1189_s28 + $0x38] sm:$0xff] %v528_v12 }
 0x105   : > { %829 = vst [vmem:[%s1196_s30 + $0x18] sm:$0xff] %v805_v11  }
 0x108   : > { %v403_v13 = vpop.f32.mrf.mxu2 }
 0x109   : > { %v825_v14 = vpack.c.bf16 %v403_v13, %v401_v8  ;;  %v548_v15 = vpop.f32.mrf.mxu3 }
 0x10a   : > { %566 = vst [vmem:[%s1189_s28 + $0x78] sm:$0xff] %v548_v15 }
 0x10b   : > { %833 = vst [vmem:[%s1196_s30 + $0x38] sm:$0xff] %v825_v14  }
 0x10c PF: > { %p16_p4 = scmp.ge.s32.totalorder %s1124_s9, 4   ;;  %s1242_s15 = smov %s1034_s16 }
 0x10d   : > { %s1243_s16 = smov %s1038_s17  ;;  %s1244_s17 = smov %s1135_s13 }
 0x10e   : > { %s1245_s18 = smov %s1124_s9  ;;  %18 = sbr.rel (!%p16_p4) target bundleno = 4 (0x4), region = 92 }
 0x113   :  { %606 = vsyncpa [#allocation3], 1 }
 0x114   :  { %608 = vsyncpa [#allocation3 + $0x1], 1 }
 0x115   :  { %609 = vsyncpa [#allocation5], 1 }

// kernel: gcn_forward.9
= control target key start
LH: loop header
LB: loop body
LE: loop exit
PB: predicated region body
PF: predicated region fallthrough
CT: control target
= control target key end

     0   :  { %s1009_s12 = smov 0   ;;  %s1011_s13 = smov 0   ;;  %s1180_s0 = inlined_call_operand.vmem [shape: bf16[256,256], index: 0, kind: input, shape index: {}]   ;;  %s1181_s1 = inlined_call_operand.vmem [shape: bf16[256,128], index: 1, kind: input, shape index: {}]   ;;  %s1182_s2 = inlined_call_operand.vmem [shape: f32[256,128], index: 2, kind: input, shape index: {}]   ;;  %s1183_s3 = inlined_call_operand.vmem [shape: f32[256,128], index: 3, kind: output, shape index: {}]  }
   0x1   :  { %s1013_s14 = smov 0   ;;  %s1015_s15 = smov 0  }
   0x2   :  { %s1017_s16 = smov 0   ;;  %s1019_s17 = smov 0  }
   0x3   :  { %s1021_s18 = smov 0  }
   0x4 LB: > { %s22_s19 = sadd.s32 1, %s978_s16  ;;  %s25_s20 = sadd.s32 1, %s982_s17  ;;  %s986_s18 = sphi %s1021_s18, %s13_s18   ;;  %s982_s17 = sphi %s1019_s17, %s1189_s17   ;;  %s978_s16 = sphi %s1017_s16, %s1188_s16   ;;  %s974_s15 = sphi %s1015_s15, %s1187_s15   ;;  %s970_s14 = sphi %s1013_s14, %s1186_s14   ;;  %s966_s13 = sphi %s1011_s13, %s1185_s13   ;;  %s962_s12 = sphi %s1009_s12, %s1184_s12  }
   0x5   : > { %p23_p0 = scmp.ge.s32.totalorder %s22_s19, 2  ;;  %p41_p1 = scmp.ne.s32.totalorder %s966_s13, %s962_s12 }
   0x6   : > { %p42_p2 = scmp.eq.s32.totalorder %s986_s18, 0  ;;  %s34_s24 = sadd.s32 1, %s966_s13 }
   0x7   : > { %s1191_s19 = smov (%p23_p0, %s22_s19), 0  ;;  %s1193_s20 = smov (!%p23_p0, %s25_s20), %s982_s17 }
   0x8   : > { %p43_p3 = por %p42_p2, %p41_p1  ;;  %p27_p4 = scmp.ge.s32.totalorder %s1193_s20, 2 }
   0x9   : > { %s30_s21 = ssub.s32 %s978_s16, %s1191_s19  ;;  %p753_p6 = scmp.ge.s32.totalorder %s986_s18, 4 }
   0xa   : > { %s1195_s20 = smov (%p27_p4, %s1193_s20), 0 }
   0xb   : > { %s29_s22 = ssub.s32 %s982_s17, %s1195_s20  ;;  %145 = sbr.rel (%p753_p6) target bundleno = 38 (0x26), region = 16 }
   0xc   : > { %s31_s23 = sor.u32 %s30_s21, %s29_s22 }
   0xd   : > { %p32_p5 = scmp.eq.s32.totalorder %s31_s23, 0 }
   0xf   : > { %s1060_s25 = scalar_select %p32_p5, %s966_s13, %s34_s24  }
  0x10   : > { %148 = sbr.rel (!%p43_p3) target bundleno = 38 (0x26), region = 20  ;;  %s150_s26 = sand.u32 (%p43_p3), 1, %s966_s13  }
  0x11   : > { %s834_s27 = sshll.u32 (%p43_p3), %s982_s17, 5  ;;  %s754_s28 = sshll.u32 (%p43_p3), %s150_s26, 6 }
  0x12   : > { %s155_s29 = sadd.s32 (%p43_p3), %s978_s16, %s834_s27  ;;  %s152_s7 = scalar_lea.vmem (%p43_p3), [#allocation3], %s754_s28 }
  0x13   : > { %s757_s30 = sshll.u32 (%p43_p3), %s155_s29, 2 }
  0x14   : > { %s1069_s6 = scalar_lea.vmem (%p43_p3), %s1180_s0, %s757_s30 }
  0x15   : > { %v174_v0 = vld [vmem:[%s1069_s6] sm:$0xf]  ;;  %v176_v1 = vld [vmem:[%s1069_s6 + $0x8] sm:$0xf]  ;;  %v178_v2 = vld [vmem:[%s1069_s6 + $0x10] sm:$0xf] }
  0x16   : > { %175 = vst [vmem:[%s152_s7] sm:$0xf] %v174_v0  ;;  %v180_v3 = vld [vmem:[%s1069_s6 + $0x18] sm:$0xf]  ;;  %v182_v4 = vld [vmem:[%s1069_s6 + $0x20] sm:$0xf] }
  0x17   : > { %177 = vst [vmem:[%s152_s7 + $0x4] sm:$0xf] %v176_v1  ;;  %v184_v5 = vld [vmem:[%s1069_s6 + $0x28] sm:$0xf]  ;;  %v186_v6 = vld [vmem:[%s1069_s6 + $0x30] sm:$0xf] }
  0x18   : > { %179 = vst [vmem:[%s152_s7 + $0x8] sm:$0xf] %v178_v2  ;;  %v188_v7 = vld [vmem:[%s1069_s6 + $0x38] sm:$0xf]  ;;  %v190_v8 = vld [vmem:[%s1069_s6 + $0x40] sm:$0xf] }
  0x19   : > { %181 = vst [vmem:[%s152_s7 + $0xc] sm:$0xf] %v180_v3  ;;  %v192_v9 = vld [vmem:[%s1069_s6 + $0x48] sm:$0xf]  ;;  %v194_v10 = vld [vmem:[%s1069_s6 + $0x50] sm:$0xf] }
  0x1a   : > { %183 = vst [vmem:[%s152_s7 + $0x10] sm:$0xf] %v182_v4  ;;  %v196_v11 = vld [vmem:[%s1069_s6 + $0x58] sm:$0xf]  ;;  %v198_v12 = vld [vmem:[%s1069_s6 + $0x60] sm:$0xf] }
  0x1b   : > { %185 = vst [vmem:[%s152_s7 + $0x14] sm:$0xf] %v184_v5  ;;  %v200_v13 = vld [vmem:[%s1069_s6 + $0x68] sm:$0xf]  ;;  %v202_v14 = vld [vmem:[%s1069_s6 + $0x70] sm:$0xf] }
  0x1c   : > { %187 = vst [vmem:[%s152_s7 + $0x18] sm:$0xf] %v186_v6  ;;  %v204_v15 = vld [vmem:[%s1069_s6 + $0x78] sm:$0xf] }
  0x1d   : > { %189 = vst [vmem:[%s152_s7 + $0x1c] sm:$0xf] %v188_v7 }
  0x1e   : > { %191 = vst [vmem:[%s152_s7 + $0x20] sm:$0xf] %v190_v8 }
  0x1f   : > { %193 = vst [vmem:[%s152_s7 + $0x24] sm:$0xf] %v192_v9 }
  0x20   : > { %195 = vst [vmem:[%s152_s7 + $0x28] sm:$0xf] %v194_v10 }
  0x21   : > { %197 = vst [vmem:[%s152_s7 + $0x2c] sm:$0xf] %v196_v11 }
  0x22   : > { %199 = vst [vmem:[%s152_s7 + $0x30] sm:$0xf] %v198_v12 }
  0x23   : > { %201 = vst [vmem:[%s152_s7 + $0x34] sm:$0xf] %v200_v13 }
  0x24   : > { %203 = vst [vmem:[%s152_s7 + $0x38] sm:$0xf] %v202_v14 }
  0x25   : > { %205 = vst [vmem:[%s152_s7 + $0x3c] sm:$0xf] %v204_v15 }
  0x26 PF: > { %p758_p7 = scmp.ge.s32.totalorder %s986_s18, 1  ;;  %p278_p8 = scmp.lt.s32.totalorder %s986_s18, 5 }
  0x28   : > { %p279_p9 = pnand %p758_p7, %p278_p8 }
  0x29   : > { %s285_s8 = sand.u32 (!%p279_p9), 1, %s962_s12   ;;  %s760_s9 = sshll.u32 (!%p279_p9), %s970_s14, 4 }
  0x2a   : > { %282 = sbr.rel (%p279_p9) target bundleno = 284 (0x11c), region = 69  ;;  %s759_s10 = sshll.u32 (!%p279_p9), %s285_s8, 6 }
  0x2b   : > { %p320_p10 = scmp.lt.s32.totalorder (!%p279_p9), %s760_s9, 31  ;;  %s762_s11 = sshll.u32 (!%p279_p9), %s974_s15, 4 }
  0x2c   : > { %p326_p11 = scmp.lt.s32.totalorder (!%p279_p9), %s762_s11, 31  ;;  %s1107_s15 = scalar_lea.vmem (!%p279_p9), [#allocation3], %s759_s10 }
  0x2d   : > { %p766_p12 = scmp.ne.s32.totalorder (!%p279_p9), %s970_s14, 0 }
  0x2f   : > { %s1197_s9 = smov (!%p320_p10, %s760_s9), 31  ;;  %s1199_s11 = smov (!%p326_p11, %s762_s11), 31 }
  0x30   : > { %s761_s21 = sshll.u32 %s1197_s9, 2  ;;  %s763_s26 = sshll.u32 %s1199_s11, 3 }
  0x31   : > { %s1095_s24 = scalar_lea.vmem %s1181_s1, %s761_s21  ;;  %s1100_s29 = scalar_lea.vmem %s1182_s2, %s763_s26 }
  0x32   : > { %s1105_s4 = scalar_lea.vmem %s1183_s3, %s763_s26  ;;  %340 = sbr.rel (%p766_p12) target bundleno = 72 (0x48), region = 77 }
  0x37   : > { %v988_v16 = vmov 0.0  }
  0x38   : > { %341 = vst [vmem:[#allocation2 + $0x30] sm:$0xff] %v988_v16 }
  0x39   : > { %342 = vst [vmem:[#allocation2] sm:$0xff] %v988_v16 }
  0x3a   : > { %343 = vst [vmem:[#allocation2 + $0x58] sm:$0xff] %v988_v16 }
  0x3b   : > { %344 = vst [vmem:[#allocation2 + $0x18] sm:$0xff] %v988_v16 }
  0x3c   : > { %345 = vst [vmem:[#allocation2 + $0x50] sm:$0xff] %v988_v16 }
  0x3d   : > { %346 = vst [vmem:[#allocation2 + $0x68] sm:$0xff] %v988_v16 }
  0x3e   : > { %347 = vst [vmem:[#allocation2 + $0x8] sm:$0xff] %v988_v16 }
  0x3f   : > { %348 = vst [vmem:[#allocation2 + $0x48] sm:$0xff] %v988_v16 }
  0x40   : > { %349 = vst [vmem:[#allocation2 + $0x40] sm:$0xff] %v988_v16 }
  0x41   : > { %350 = vst [vmem:[#allocation2 + $0x20] sm:$0xff] %v988_v16 }
  0x42   : > { %351 = vst [vmem:[#allocation2 + $0x10] sm:$0xff] %v988_v16 }
  0x43   : > { %352 = vst [vmem:[#allocation2 + $0x38] sm:$0xff] %v988_v16 }
  0x44   : > { %353 = vst [vmem:[#allocation2 + $0x60] sm:$0xff] %v988_v16 }
  0x45   : > { %354 = vst [vmem:[#allocation2 + $0x70] sm:$0xff] %v988_v16 }
  0x46   : > { %355 = vst [vmem:[#allocation2 + $0x78] sm:$0xff] %v988_v16 }
  0x47   : > { %356 = vst [vmem:[#allocation2 + $0x28] sm:$0xff] %v988_v16 }
  0x48 PF: > { %v850_v17 = vld [vmem:[%s1095_s24 + $0x38] sm:$0xff]  ;;  %v849_v18 = vld [vmem:[%s1095_s24 + $0x30] sm:$0xff]  ;;  %v848_v19 = vld [vmem:[%s1095_s24 + $0x28] sm:$0xff]  ;;  %p831_p13 = scmp.ne.s32.totalorder %s970_s14, 1 }
  0x49   : > { %501 = vmatpush.bf16.msra.mxu0 %v850_v17  ;;  %851 = vmatpush.bf16.msra.mxu1 %v850_v17  ;;  %v847_v20 = vld [vmem:[%s1095_s24 + $0x20] sm:$0xff]  ;;  %v846_v21 = vld [vmem:[%s1095_s24 + $0x18] sm:$0xff]  ;;  %v845_v22 = vld [vmem:[%s1095_s24 + $0x10] sm:$0xff] }
  0x4a   : > { %852 = vmatpush.bf16.msra.mxu2 %v850_v17  ;;  %853 = vmatpush.bf16.msra.mxu3 %v850_v17  ;;  %v844_v23 = vld [vmem:[%s1095_s24 + $0x8] sm:$0xff]  ;;  %v843_v24 = vld [vmem:[%s1095_s24] sm:$0xff]  ;;  %v837_v26 = vld [vmem:[%s1107_s15 + $0x10] sm:$0xff] }
  0x4b   : > { %v835_v25 = vld [vmem:[%s1107_s15] sm:$0xff]  ;;  %v841_v28 = vld [vmem:[%s1107_s15 + $0x30] sm:$0xff]  ;;  %v836_v29 = vld [vmem:[%s1107_s15 + $0x8] sm:$0xff] }
  0x4c   : > { %v839_v27 = vld [vmem:[%s1107_s15 + $0x20] sm:$0xff]  ;;  %v838_v30 = vld [vmem:[%s1107_s15 + $0x18] sm:$0xff]  ;;  %v840_v31 = vld [vmem:[%s1107_s15 + $0x28] sm:$0xff] }
  0x4d   : > { %502 = vmatpush.bf16.msra.mxu0 %v849_v18  ;;  %854 = vmatpush.bf16.msra.mxu1 %v849_v18  ;;  %v842_v32 = vld [vmem:[%s1107_s15 + $0x38] sm:$0xff]  ;;  %v357_v33 = vld [vmem:[#allocation2 + $0x30] sm:$0xff]  ;;  %v365_v39 = vld [vmem:[#allocation2 + $0x40] sm:$0xff] }
  0x4e   : > { %855 = vmatpush.bf16.msra.mxu2 %v849_v18  ;;  %856 = vmatpush.bf16.msra.mxu3 %v849_v18  ;;  %v361_v34 = vld [vmem:[#allocation2 + $0x50] sm:$0xff]  ;;  %v369_v40 = vld [vmem:[#allocation2 + $0x60] sm:$0xff]  ;;  %v362_v42 = vld [vmem:[#allocation2 + $0x68] sm:$0xff] }
  0x4f   : > { %v358_v41 = vld [vmem:[#allocation2] sm:$0xff]  ;;  %v370_v52 = vld [vmem:[#allocation2 + $0x70] sm:$0xff]  ;;  %v359_v53 = vld [vmem:[#allocation2 + $0x58] sm:$0xff] }
  0x50   : > { %v366_v51 = vld [vmem:[#allocation2 + $0x20] sm:$0xff]  ;;  %v363_v54 = vld [vmem:[#allocation2 + $0x8] sm:$0xff]  ;;  %v367_v63 = vld [vmem:[#allocation2 + $0x10] sm:$0xff] }
  0x51   : > { %503 = vmatpush.bf16.msra.mxu0 %v848_v19  ;;  %857 = vmatpush.bf16.msra.mxu1 %v848_v19  ;;  %v371_v0 = vld [vmem:[#allocation2 + $0x78] sm:$0xff]  ;;  %v364_v2 = vld [vmem:[#allocation2 + $0x48] sm:$0xff] }
  0x52   : > { %858 = vmatpush.bf16.msra.mxu2 %v848_v19  ;;  %859 = vmatpush.bf16.msra.mxu3 %v848_v19  ;;  %v360_v1 = vld [vmem:[#allocation2 + $0x18] sm:$0xff]  ;;  %v372_v12 = vld [vmem:[#allocation2 + $0x28] sm:$0xff] }
  0x53   : > { %v368_v11 = vld [vmem:[#allocation2 + $0x38] sm:$0xff] }
  0x55   : > { %504 = vmatpush.bf16.msra.mxu0 %v847_v20  ;;  %860 = vmatpush.bf16.msra.mxu1 %v847_v20 }
  0x56   : > { %861 = vmatpush.bf16.msra.mxu2 %v847_v20  ;;  %862 = vmatpush.bf16.msra.mxu3 %v847_v20 }
  0x59   : > { %505 = vmatpush.bf16.msra.mxu0 %v846_v21  ;;  %863 = vmatpush.bf16.msra.mxu1 %v846_v21 }
  0x5a   : > { %864 = vmatpush.bf16.msra.mxu2 %v846_v21  ;;  %865 = vmatpush.bf16.msra.mxu3 %v846_v21 }
  0x5d   : > { %506 = vmatpush.bf16.msra.mxu0 %v845_v22  ;;  %866 = vmatpush.bf16.msra.mxu1 %v845_v22 }
  0x5e   : > { %867 = vmatpush.bf16.msra.mxu2 %v845_v22  ;;  %868 = vmatpush.bf16.msra.mxu3 %v845_v22 }
  0x61   : > { %507 = vmatpush.bf16.msra.mxu0 %v844_v23  ;;  %869 = vmatpush.bf16.msra.mxu1 %v844_v23 }
  0x62   : > { %870 = vmatpush.bf16.msra.mxu2 %v844_v23  ;;  %871 = vmatpush.bf16.msra.mxu3 %v844_v23 }
  0x65   : > { %508 = vmatpush.bf16.msra.mxu0 %v843_v24  ;;  %872 = vmatpush.bf16.msra.mxu1 %v843_v24 }
  0x66   : > { %873 = vmatpush.bf16.msra.mxu2 %v843_v24  ;;  %874 = vmatpush.bf16.msra.mxu3 %v843_v24 }
  0x68   : > { %509 = vmatmul.bf16.vlgmr.msra.gmra.mxu0 %v835_v25  ;;  %519 = vmatmul.bf16.vlgmr.msra.gmra.mxu1 %v837_v26 }
  0x69   : > { %529 = vmatmul.bf16.vlgmr.msra.gmra.mxu2 %v839_v27  ;;  %539 = vmatmul.bf16.vlgmr.msra.gmra.mxu3 %v841_v28 }
  0x78   : > { %514 = vmatmul.bf16.gmra.mxu0 %v836_v29  ;;  %524 = vmatmul.bf16.gmra.mxu1 %v838_v30 }
  0x79   : > { %534 = vmatmul.bf16.gmra.mxu2 %v840_v31  ;;  %544 = vmatmul.bf16.gmra.mxu3 %v842_v32 }
  0xe5   : > { %v510_v35 = vpop.f32.mrf.mxu0  ;;  %v520_v36 = vpop.f32.mrf.mxu1 }
  0xe6   : > { %v550_v37 = vadd.f32 %v510_v35, %v357_v33  ;;  %v554_v38 = vadd.f32 %v520_v36, %v361_v34 }
  0xe8   : > { %566 = vst [vmem:[#allocation2 + $0x30] sm:$0xff] %v550_v37 }
  0xe9   : > { %570 = vst [vmem:[#allocation2 + $0x50] sm:$0xff] %v554_v38 }
  0xec   : > { %v530_v43 = vpop.f32.mrf.mxu2  ;;  %v540_v44 = vpop.f32.mrf.mxu3 }
  0xed   : > { %v558_v45 = vadd.f32 %v530_v43, %v365_v39  ;;  %v562_v46 = vadd.f32 %v540_v44, %v369_v40  ;;  %v512_v47 = vpop.f32.mrf.mxu0  ;;  %v522_v48 = vpop.f32.mrf.mxu1 }
  0xee   : > { %v551_v49 = vadd.f32 %v512_v47, %v358_v41  ;;  %v555_v50 = vadd.f32 %v522_v48, %v362_v42 }
  0xef   : > { %574 = vst [vmem:[#allocation2 + $0x40] sm:$0xff] %v558_v45 }
  0xf0   : > { %578 = vst [vmem:[#allocation2 + $0x60] sm:$0xff] %v562_v46 }
  0xf1   : > { %567 = vst [vmem:[#allocation2] sm:$0xff] %v551_v49 }
  0xf2   : > { %571 = vst [vmem:[#allocation2 + $0x68] sm:$0xff] %v555_v50 }
  0xf4   : > { %v532_v55 = vpop.f32.mrf.mxu2  ;;  %v542_v56 = vpop.f32.mrf.mxu3 }
  0xf5   : > { %v559_v57 = vadd.f32 %v532_v55, %v366_v51  ;;  %v563_v58 = vadd.f32 %v542_v56, %v370_v52  ;;  %v515_v59 = vpop.f32.mrf.mxu0  ;;  %v525_v60 = vpop.f32.mrf.mxu1 }
  0xf6   : > { %v552_v61 = vadd.f32 %v515_v59, %v359_v53  ;;  %v556_v62 = vadd.f32 %v525_v60, %v363_v54 }
  0xf7   : > { %575 = vst [vmem:[#allocation2 + $0x20] sm:$0xff] %v559_v57 }
  0xf8   : > { %579 = vst [vmem:[#allocation2 + $0x70] sm:$0xff] %v563_v58 }
  0xf9   : > { %568 = vst [vmem:[#allocation2 + $0x58] sm:$0xff] %v552_v61 }
  0xfa   : > { %572 = vst [vmem:[#allocation2 + $0x8] sm:$0xff] %v556_v62 }
  0xfc   : > { %v535_v3 = vpop.f32.mrf.mxu2  ;;  %v545_v4 = vpop.f32.mrf.mxu3 }
  0xfd   : > { %v560_v5 = vadd.f32 %v535_v3, %v367_v63  ;;  %v564_v6 = vadd.f32 %v545_v4, %v371_v0  ;;  %v517_v7 = vpop.f32.mrf.mxu0  ;;  %v527_v8 = vpop.f32.mrf.mxu1 }
  0xfe   : > { %v553_v9 = vadd.f32 %v517_v7, %v360_v1  ;;  %v557_v10 = vadd.f32 %v527_v8, %v364_v2 }
  0xff   : > { %576 = vst [vmem:[#allocation2 + $0x10] sm:$0xff] %v560_v5 }
 0x100   : > { %580 = vst [vmem:[#allocation2 + $0x78] sm:$0xff] %v564_v6 }
 0x101   : > { %569 = vst [vmem:[#allocation2 + $0x18] sm:$0xff] %v553_v9 }
 0x102   : > { %573 = vst [vmem:[#allocation2 + $0x48] sm:$0xff] %v557_v10 }
 0x104   : > { %v537_v13 = vpop.f32.mrf.mxu2  ;;  %v547_v14 = vpop.f32.mrf.mxu3  ;;  %585 = sbr.rel (%p831_p13) target bundleno = 284 (0x11c), region = 81 }
 0x105   : > { %v561_v15 = vadd.f32 %v537_v13, %v368_v11  ;;  %v565_v16 = vadd.f32 %v547_v14, %v372_v12 }
 0x107   : > { %577 = vst [vmem:[#allocation2 + $0x38] sm:$0xff] %v561_v15 }
 0x108   : > { %581 = vst [vmem:[#allocation2 + $0x28] sm:$0xff] %v565_v16 }
 0x109   : > { %v586_v17 = vld [vmem:[#allocation2 + $0x30] sm:$0xff]  ;;  %v602_v18 = vld [vmem:[%s1100_s29] sm:$0xff]  ;;  %v603_v21 = vld [vmem:[%s1100_s29 + $0x8] sm:$0xff] }
 0x10a   : > { %v587_v19 = vld [vmem:[#allocation2] sm:$0xff]  ;;  %v618_v20 = vadd.f32 %v602_v18, %v586_v17  ;;  %v588_v22 = vld [vmem:[#allocation2 + $0x58] sm:$0xff]  ;;  %v604_v23 = vld [vmem:[%s1100_s29 + $0x10] sm:$0xff] }
 0x10b   : > { %v619_v24 = vadd.f32 %v603_v21, %v587_v19  ;;  %v620_v25 = vadd.f32 %v604_v23, %v588_v22  ;;  %v589_v26 = vld [vmem:[#allocation2 + $0x18] sm:$0xff]  ;;  %v590_v28 = vld [vmem:[#allocation2 + $0x50] sm:$0xff]  ;;  %v606_v30 = vld [vmem:[%s1100_s29 + $0x20] sm:$0xff] }
 0x10c   : > { %v605_v27 = vld [vmem:[%s1100_s29 + $0x18] sm:$0xff]  ;;  %634 = vst [vmem:[%s1105_s4] sm:$0xff] %v618_v20  ;;  %v591_v31 = vld [vmem:[#allocation2 + $0x68] sm:$0xff]  ;;  %v622_v33 = vadd.f32 %v606_v30, %v590_v28  ;;  %v608_v36 = vld [vmem:[%s1100_s29 + $0x30] sm:$0xff] }
 0x10d   : > { %v621_v29 = vadd.f32 %v605_v27, %v589_v26  ;;  %v607_v32 = vld [vmem:[%s1100_s29 + $0x28] sm:$0xff]  ;;  %635 = vst [vmem:[%s1105_s4 + $0x8] sm:$0xff] %v619_v24  ;;  %v609_v39 = vld [vmem:[%s1100_s29 + $0x38] sm:$0xff]  ;;  %v594_v40 = vld [vmem:[#allocation2 + $0x40] sm:$0xff] }
 0x10e   : > { %v623_v34 = vadd.f32 %v607_v32, %v591_v31  ;;  %v592_v35 = vld [vmem:[#allocation2 + $0x8] sm:$0xff]  ;;  %636 = vst [vmem:[%s1105_s4 + $0x10] sm:$0xff] %v620_v25  ;;  %v610_v41 = vld [vmem:[%s1100_s29 + $0x40] sm:$0xff]  ;;  %v596_v45 = vld [vmem:[#allocation2 + $0x10] sm:$0xff] }
 0x10f   : > { %v593_v37 = vld [vmem:[#allocation2 + $0x48] sm:$0xff]  ;;  %v624_v38 = vadd.f32 %v608_v36, %v592_v35  ;;  %637 = vst [vmem:[%s1105_s4 + $0x18] sm:$0xff] %v621_v29  ;;  %v595_v43 = vld [vmem:[#allocation2 + $0x20] sm:$0xff]  ;;  %v626_v46 = vadd.f32 %v610_v41, %v594_v40  ;;  %v612_v47 = vld [vmem:[%s1100_s29 + $0x50] sm:$0xff] }
 0x110   : > { %v625_v42 = vadd.f32 %v609_v39, %v593_v37  ;;  %v611_v44 = vld [vmem:[%s1100_s29 + $0x48] sm:$0xff]  ;;  %638 = vst [vmem:[%s1105_s4 + $0x20] sm:$0xff] %v622_v33  ;;  %v597_v48 = vld [vmem:[#allocation2 + $0x38] sm:$0xff]  ;;  %v598_v51 = vld [vmem:[#allocation2 + $0x60] sm:$0xff]  ;;  %v628_v53 = vadd.f32 %v612_v47, %v596_v45 }
 0x111   : > { %v613_v49 = vld [vmem:[%s1100_s29 + $0x58] sm:$0xff]  ;;  %639 = vst [vmem:[%s1105_s4 + $0x28] sm:$0xff] %v623_v34  ;;  %v627_v50 = vadd.f32 %v611_v44, %v595_v43  ;;  %v614_v52 = vld [vmem:[%s1100_s29 + $0x60] sm:$0xff]  ;;  %v599_v54 = vld [vmem:[#allocation2 + $0x70] sm:$0xff] }
 0x112   : > { %640 = vst [vmem:[%s1105_s4 + $0x30] sm:$0xff] %v624_v38  ;;  %v615_v55 = vld [vmem:[%s1100_s29 + $0x68] sm:$0xff]  ;;  %v629_v56 = vadd.f32 %v613_v49, %v597_v48  ;;  %v600_v57 = vld [vmem:[#allocation2 + $0x78] sm:$0xff]  ;;  %v616_v58 = vld [vmem:[%s1100_s29 + $0x70] sm:$0xff]  ;;  %v630_v59 = vadd.f32 %v614_v52, %v598_v51 }
 0x113   : > { %641 = vst [vmem:[%s1105_s4 + $0x38] sm:$0xff] %v625_v42  ;;  %v601_v60 = vld [vmem:[#allocation2 + $0x28] sm:$0xff]  ;;  %v617_v61 = vld [vmem:[%s1100_s29 + $0x78] sm:$0xff]  ;;  %v631_v62 = vadd.f32 %v615_v55, %v599_v54  ;;  %v632_v63 = vadd.f32 %v616_v58, %v600_v57 }
 0x114   : > { %642 = vst [vmem:[%s1105_s4 + $0x40] sm:$0xff] %v626_v46  ;;  %v633_v0 = vadd.f32 %v617_v61, %v601_v60 }
 0x115   : > { %643 = vst [vmem:[%s1105_s4 + $0x48] sm:$0xff] %v627_v50 }
 0x116   : > { %644 = vst [vmem:[%s1105_s4 + $0x50] sm:$0xff] %v628_v53 }
 0x117   : > { %645 = vst [vmem:[%s1105_s4 + $0x58] sm:$0xff] %v629_v56 }
 0x118   : > { %646 = vst [vmem:[%s1105_s4 + $0x60] sm:$0xff] %v630_v59 }
 0x119   : > { %647 = vst [vmem:[%s1105_s4 + $0x68] sm:$0xff] %v631_v62 }
 0x11a   : > { %648 = vst [vmem:[%s1105_s4 + $0x70] sm:$0xff] %v632_v63 }
 0x11b   : > { %649 = vst [vmem:[%s1105_s4 + $0x78] sm:$0xff] %v633_v0 }
 0x11c PF: > { %s13_s18 = sadd.s32 1, %s986_s18   ;;  %s1184_s12 = smov %s966_s13 }
 0x11d   : > { %p10_p0 = scmp.ge.s32.totalorder %s13_s18, 6   ;;  %s1185_s13 = smov %s1060_s25 }
 0x11e   : > { %s1186_s14 = smov %s978_s16  ;;  %s1187_s15 = smov %s982_s17 }
 0x11f   : > { %s1188_s16 = smov %s1191_s19  ;;  %s1189_s17 = smov %s1195_s20 }
 0x120   :  { %12 = sbr.rel (!%p10_p0) target bundleno = 4 (0x4), region = 122 }

// kernel: gcn_forward.11
= control target key start
LH: loop header
LB: loop body
LE: loop exit
PB: predicated region body
PF: predicated region fallthrough
CT: control target
= control target key end

     0   :  { %s883_s18 = smov 0   ;;  %s1044_s0 = inlined_call_operand.vmem [shape: f32[256,128], index: 0, kind: input, shape index: {}]   ;;  %s1045_s1 = inlined_call_operand.vmem [shape: f32[2,128], index: 1, kind: input, shape index: {}]   ;;  %s1046_s2 = inlined_call_operand.vmem [shape: bf16[128,128], index: 2, kind: input, shape index: {}]   ;;  %s1047_s3 = inlined_call_operand.vmem [shape: bf16[128,128], index: 3, kind: input, shape index: {}]   ;;  %s1048_s4 = inlined_call_operand.vmem [shape: bf16[256,128], index: 4, kind: output, shape index: {0}]   ;;  %s1049_s5 = inlined_call_operand.vmem [shape: f32[256,128], index: 5, kind: output, shape index: {1}]  }
   0x1 LB: > { %s681_s19 = sadd.s32 4294967295, %s851_s18   ;;  %p685_p0 = scmp.ge.s32.totalorder %s851_s18, 1  ;;  %s851_s18 = sphi %s883_s18, %s16_s18  }
   0x2   : > { %p191_p1 = scmp.lt.s32.totalorder %s851_s18, 3 }
   0x4   : > { %p192_p2 = pnand %p685_p0, %p191_p1 }
   0x5   : > { %s686_s24 = sshll.u32 (!%p192_p2), %s681_s19, 4 }
   0x6   : > { %195 = sbr.rel (%p192_p2) target bundleno = 234 (0xea), region = 36  ;;  %p225_p3 = scmp.lt.s32.totalorder (!%p192_p2), %s686_s24, 31 }
   0xb   : > { %v765_v0 = vld [vmem:[%s1046_s2 + $0x38] sm:$0xff]  ;;  %v764_v2 = vld [vmem:[%s1046_s2 + $0x30] sm:$0xff]  ;;  %s1051_s24 = smov (!%p225_p3, %s686_s24), 31  ;;  %v763_v4 = vld [vmem:[%s1046_s2 + $0x28] sm:$0xff] }
   0xc   : > { %v773_v1 = vld [vmem:[%s1047_s3 + $0x38] sm:$0xff]  ;;  %381 = vmatpush.bf16.msra.mxu0 %v765_v0  ;;  %821 = vmatpush.bf16.msra.mxu2 %v765_v0  ;;  %v772_v3 = vld [vmem:[%s1047_s3 + $0x30] sm:$0xff]  ;;  %v771_v5 = vld [vmem:[%s1047_s3 + $0x28] sm:$0xff]  ;;  %s687_s8 = sshll.u32 %s1051_s24, 3  ;;  %s689_s15 = sshll.u32 %s1051_s24, 2 }
   0xd   : > { %526 = vmatpush.bf16.msra.mxu1 %v773_v1  ;;  %829 = vmatpush.bf16.msra.mxu3 %v773_v1  ;;  %v762_v6 = vld [vmem:[%s1046_s2 + $0x20] sm:$0xff]  ;;  %s920_s13 = scalar_lea.vmem %s1044_s0, %s687_s8  ;;  %v761_v9 = vld [vmem:[%s1046_s2 + $0x18] sm:$0xff]  ;;  %v760_v21 = vld [vmem:[%s1046_s2 + $0x10] sm:$0xff]  ;;  %s1009_s14 = scalar_lea.vmem %s1049_s5, %s687_s8 }
   0xe   : > { %v258_v7 = vld [vmem:[%s1045_s1] sm:$0x3]  ;;  %v243_v12 = vld [vmem:[%s920_s13 + $0x8] sm:$0xff]  ;;  %v769_v15 = vld [vmem:[%s1047_s3 + $0x18] sm:$0xff]  ;;  %s1017_s19 = scalar_lea.vmem %s1048_s4, %s689_s15 }
   0xf   : > { %v770_v8 = vld [vmem:[%s1047_s3 + $0x20] sm:$0xff]  ;;  %v932_v11 = vperm.slane %v258_v7, 0  ;;  %v251_v14 = vld [vmem:[%s920_s13 + $0x48] sm:$0xff]  ;;  %v940_v16 = vperm.slane %v258_v7, 1  ;;  %v768_v22 = vld [vmem:[%s1047_s3 + $0x10] sm:$0xff] }
  0x10   : > { %382 = vmatpush.bf16.msra.mxu0 %v764_v2  ;;  %822 = vmatpush.bf16.msra.mxu2 %v764_v2  ;;  %v242_v10 = vld [vmem:[%s920_s13] sm:$0xff]  ;;  %v759_v27 = vld [vmem:[%s1046_s2 + $0x8] sm:$0xff]  ;;  %v244_v37 = vld [vmem:[%s920_s13 + $0x10] sm:$0xff] }
  0x11   : > { %527 = vmatpush.bf16.msra.mxu1 %v772_v3  ;;  %830 = vmatpush.bf16.msra.mxu3 %v772_v3  ;;  %v250_v13 = vld [vmem:[%s920_s13 + $0x40] sm:$0xff]  ;;  %v260_v17 = vmul.f32 %v932_v11, %v242_v10  ;;  %v261_v18 = vmul.f32 %v932_v11, %v243_v12  ;;  %v269_v20 = vmul.f32 %v932_v11, %v251_v14  ;;  %v767_v28 = vld [vmem:[%s1047_s3 + $0x8] sm:$0xff]  ;;  %v245_v38 = vld [vmem:[%s920_s13 + $0x18] sm:$0xff] }
  0x12   : > { %v268_v19 = vmul.f32 %v932_v11, %v250_v13  ;;  %v758_v33 = vld [vmem:[%s1046_s2] sm:$0xff]  ;;  %v252_v39 = vld [vmem:[%s920_s13 + $0x50] sm:$0xff]  ;;  %v253_v40 = vld [vmem:[%s920_s13 + $0x58] sm:$0xff]  ;;  %v262_v41 = vmul.f32 %v932_v11, %v244_v37  ;;  %v263_v42 = vmul.f32 %v932_v11, %v245_v38 }
  0x13   : > { %v277_v23 = vadd.f32 %v940_v16, %v260_v17  ;;  %v278_v24 = vadd.f32 %v940_v16, %v261_v18  ;;  %v286_v26 = vadd.f32 %v940_v16, %v269_v20  ;;  %v766_v34 = vld [vmem:[%s1047_s3] sm:$0xff]  ;;  %v270_v43 = vmul.f32 %v932_v11, %v252_v39  ;;  %v247_v56 = vld [vmem:[%s920_s13 + $0x28] sm:$0xff]  ;;  %v249_v10 = vld [vmem:[%s920_s13 + $0x38] sm:$0xff] }
  0x14   : > { %383 = vmatpush.bf16.msra.mxu0 %v763_v4  ;;  %823 = vmatpush.bf16.msra.mxu2 %v763_v4  ;;  %v285_v25 = vadd.f32 %v940_v16, %v268_v19  ;;  %v271_v44 = vmul.f32 %v932_v11, %v253_v40  ;;  %v279_v45 = vadd.f32 %v940_v16, %v262_v41  ;;  %v246_v55 = vld [vmem:[%s920_s13 + $0x20] sm:$0xff]  ;;  %v255_v58 = vld [vmem:[%s920_s13 + $0x68] sm:$0xff]  ;;  %v256_v12 = vld [vmem:[%s920_s13 + $0x70] sm:$0xff] }
  0x15   : > { %528 = vmatpush.bf16.msra.mxu1 %v771_v5  ;;  %831 = vmatpush.bf16.msra.mxu3 %v771_v5  ;;  %v293_v29 = vmax.f32 %v277_v23, 0.0  ;;  %v294_v30 = vmax.f32 %v278_v24, 0.0  ;;  %v302_v32 = vmax.f32 %v286_v26, 0.0  ;;  %v280_v46 = vadd.f32 %v940_v16, %v263_v42  ;;  %v254_v57 = vld [vmem:[%s920_s13 + $0x60] sm:$0xff]  ;;  %v257_v13 = vld [vmem:[%s920_s13 + $0x78] sm:$0xff] }
  0x16   : > { %v301_v31 = vmax.f32 %v285_v25, 0.0  ;;  %v287_v47 = vadd.f32 %v940_v16, %v270_v43  ;;  %v288_v48 = vadd.f32 %v940_v16, %v271_v44  ;;  %v295_v49 = vmax.f32 %v279_v45, 0.0 }
  0x17   : > { %v309_v35 = vpack.c.bf16 %v294_v30, %v293_v29  ;;  %v296_v50 = vmax.f32 %v280_v46, 0.0  ;;  %v264_v59 = vmul.f32 %v932_v11, %v246_v55  ;;  %v265_v60 = vmul.f32 %v932_v11, %v247_v56 }
  0x18   : > { %384 = vmatpush.bf16.msra.mxu0 %v762_v6  ;;  %824 = vmatpush.bf16.msra.mxu2 %v762_v6  ;;  %v313_v36 = vpack.c.bf16 %v302_v32, %v301_v31  ;;  %v303_v51 = vmax.f32 %v287_v47, 0.0  ;;  %v304_v52 = vmax.f32 %v288_v48, 0.0  ;;  %v272_v61 = vmul.f32 %v932_v11, %v254_v57 }
  0x19   : > { %529 = vmatpush.bf16.msra.mxu1 %v770_v8  ;;  %832 = vmatpush.bf16.msra.mxu3 %v770_v8  ;;  %v310_v53 = vpack.c.bf16 %v296_v50, %v295_v49  ;;  %v273_v62 = vmul.f32 %v932_v11, %v255_v58  ;;  %v281_v63 = vadd.f32 %v940_v16, %v264_v59 }
  0x1a   : > { %v314_v54 = vpack.c.bf16 %v304_v52, %v303_v51  ;;  %v282_v0 = vadd.f32 %v940_v16, %v265_v60  ;;  %v289_v1 = vadd.f32 %v940_v16, %v272_v61  ;;  %v274_v17 = vmul.f32 %v932_v11, %v256_v12 }
  0x1b   : > { %v290_v2 = vadd.f32 %v940_v16, %v273_v62  ;;  %v297_v3 = vmax.f32 %v281_v63, 0.0  ;;  %v275_v18 = vmul.f32 %v932_v11, %v257_v13 }
  0x1c   : > { %385 = vmatpush.bf16.msra.mxu0 %v761_v9  ;;  %825 = vmatpush.bf16.msra.mxu2 %v761_v9  ;;  %v298_v4 = vmax.f32 %v282_v0, 0.0  ;;  %v305_v5 = vmax.f32 %v289_v1, 0.0  ;;  %v248_v9 = vld [vmem:[%s920_s13 + $0x30] sm:$0xff] }
  0x1d   : > { %530 = vmatpush.bf16.msra.mxu1 %v769_v15  ;;  %833 = vmatpush.bf16.msra.mxu3 %v769_v15  ;;  %v306_v6 = vmax.f32 %v290_v2, 0.0  ;;  %v266_v14 = vmul.f32 %v932_v11, %v248_v9  ;;  %v267_v15 = vmul.f32 %v932_v11, %v249_v10 }
  0x1e   : > { %v311_v7 = vpack.c.bf16 %v298_v4, %v297_v3 }
  0x1f   : > { %v315_v8 = vpack.c.bf16 %v306_v6, %v305_v5  ;;  %v283_v19 = vadd.f32 %v940_v16, %v266_v14  ;;  %v284_v20 = vadd.f32 %v940_v16, %v267_v15 }
  0x20   : > { %386 = vmatpush.bf16.msra.mxu0 %v760_v21  ;;  %826 = vmatpush.bf16.msra.mxu2 %v760_v21  ;;  %v291_v21 = vadd.f32 %v940_v16, %v274_v17 }
  0x21   : > { %531 = vmatpush.bf16.msra.mxu1 %v768_v22  ;;  %834 = vmatpush.bf16.msra.mxu3 %v768_v22  ;;  %v292_v22 = vadd.f32 %v940_v16, %v275_v18  ;;  %v299_v23 = vmax.f32 %v283_v19, 0.0  ;;  %v300_v24 = vmax.f32 %v284_v20, 0.0 }
  0x22   : > { %v307_v25 = vmax.f32 %v291_v21, 0.0 }
  0x23   : > { %v308_v26 = vmax.f32 %v292_v22, 0.0 }
  0x24   : > { %387 = vmatpush.bf16.msra.mxu0 %v759_v27  ;;  %827 = vmatpush.bf16.msra.mxu2 %v759_v27  ;;  %v312_v27 = vpack.c.bf16 %v300_v24, %v299_v23 }
  0x25   : > { %532 = vmatpush.bf16.msra.mxu1 %v767_v28  ;;  %835 = vmatpush.bf16.msra.mxu3 %v767_v28  ;;  %v316_v28 = vpack.c.bf16 %v308_v26, %v307_v25 }
  0x28   : > { %388 = vmatpush.bf16.msra.mxu0 %v758_v33  ;;  %828 = vmatpush.bf16.msra.mxu2 %v758_v33 }
  0x29   : > { %533 = vmatpush.bf16.msra.mxu1 %v766_v34  ;;  %836 = vmatpush.bf16.msra.mxu3 %v766_v34 }
  0x2b   : > { %389 = vmatmul.bf16.vlgmr.msra.gmra.mxu0 %v309_v35  ;;  %409 = vmatmul.bf16.vlgmr.msra.gmra.mxu2 %v313_v36 }
  0x2c   : > { %534 = vmatmul.bf16.vlgmr.msra.gmra.mxu1 %v309_v35  ;;  %554 = vmatmul.bf16.vlgmr.msra.gmra.mxu3 %v313_v36 }
  0x3b   : > { %394 = vmatmul.bf16.gmra.mxu0 %v310_v53  ;;  %414 = vmatmul.bf16.gmra.mxu2 %v314_v54 }
  0x3c   : > { %539 = vmatmul.bf16.gmra.mxu1 %v310_v53  ;;  %559 = vmatmul.bf16.gmra.mxu3 %v314_v54 }
  0x4b   : > { %399 = vmatmul.bf16.gmra.mxu0 %v311_v7  ;;  %419 = vmatmul.bf16.gmra.mxu2 %v315_v8 }
  0x4c   : > { %544 = vmatmul.bf16.gmra.mxu1 %v311_v7  ;;  %564 = vmatmul.bf16.gmra.mxu3 %v315_v8 }
  0x5b   : > { %404 = vmatmul.bf16.gmra.mxu0 %v312_v27  ;;  %424 = vmatmul.bf16.gmra.mxu2 %v316_v28 }
  0x5c   : > { %549 = vmatmul.bf16.gmra.mxu1 %v312_v27  ;;  %569 = vmatmul.bf16.gmra.mxu3 %v316_v28 }
  0xa8   : > { %v390_v11 = vpop.f32.mrf.mxu0 }
  0xa9   : > { %v535_v16 = vpop.f32.mrf.mxu1 }
  0xaa   : > { %575 = vst [vmem:[%s1009_s14] sm:$0xff] %v535_v16 }
  0xae   : > { %v410_v29 = vpop.f32.mrf.mxu2 }
  0xaf   : > { %v555_v30 = vpop.f32.mrf.mxu3 }
  0xb0   : > { %583 = vst [vmem:[%s1009_s14 + $0x40] sm:$0xff] %v555_v30  ;;  %v392_v31 = vpop.f32.mrf.mxu0 }
  0xb1   : > { %v777_v32 = vpack.c.bf16 %v392_v31, %v390_v11  ;;  %v537_v33 = vpop.f32.mrf.mxu1 }
  0xb2   : > { %576 = vst [vmem:[%s1009_s14 + $0x8] sm:$0xff] %v537_v33 }
  0xb3   : > { %778 = vst [vmem:[%s1017_s19] sm:$0xff] %v777_v32  }
  0xb6   : > { %v412_v34 = vpop.f32.mrf.mxu2 }
  0xb7   : > { %v797_v35 = vpack.c.bf16 %v412_v34, %v410_v29  ;;  %v557_v36 = vpop.f32.mrf.mxu3 }
  0xb8   : > { %584 = vst [vmem:[%s1009_s14 + $0x48] sm:$0xff] %v557_v36  ;;  %v395_v37 = vpop.f32.mrf.mxu0 }
  0xb9   : > { %817 = vst [vmem:[%s1017_s19 + $0x20] sm:$0xff] %v797_v35   ;;  %v540_v38 = vpop.f32.mrf.mxu1 }
  0xba   : > { %577 = vst [vmem:[%s1009_s14 + $0x10] sm:$0xff] %v540_v38 }
  0xbe   : > { %v415_v39 = vpop.f32.mrf.mxu2 }
  0xbf   : > { %v560_v40 = vpop.f32.mrf.mxu3 }
  0xc0   : > { %585 = vst [vmem:[%s1009_s14 + $0x50] sm:$0xff] %v560_v40  ;;  %v397_v41 = vpop.f32.mrf.mxu0 }
  0xc1   : > { %v782_v42 = vpack.c.bf16 %v397_v41, %v395_v37  ;;  %v542_v43 = vpop.f32.mrf.mxu1 }
  0xc2   : > { %578 = vst [vmem:[%s1009_s14 + $0x18] sm:$0xff] %v542_v43 }
  0xc3   : > { %814 = vst [vmem:[%s1017_s19 + $0x8] sm:$0xff] %v782_v42  }
  0xc6   : > { %v417_v44 = vpop.f32.mrf.mxu2 }
  0xc7   : > { %v802_v45 = vpack.c.bf16 %v417_v44, %v415_v39  ;;  %v562_v46 = vpop.f32.mrf.mxu3 }
  0xc8   : > { %586 = vst [vmem:[%s1009_s14 + $0x58] sm:$0xff] %v562_v46  ;;  %v400_v47 = vpop.f32.mrf.mxu0 }
  0xc9   : > { %818 = vst [vmem:[%s1017_s19 + $0x28] sm:$0xff] %v802_v45   ;;  %v545_v48 = vpop.f32.mrf.mxu1 }
  0xca   : > { %579 = vst [vmem:[%s1009_s14 + $0x20] sm:$0xff] %v545_v48 }
  0xce   : > { %v420_v49 = vpop.f32.mrf.mxu2 }
  0xcf   : > { %v565_v50 = vpop.f32.mrf.mxu3 }
  0xd0   : > { %587 = vst [vmem:[%s1009_s14 + $0x60] sm:$0xff] %v565_v50  ;;  %v402_v51 = vpop.f32.mrf.mxu0 }
  0xd1   : > { %v787_v52 = vpack.c.bf16 %v402_v51, %v400_v47  ;;  %v547_v53 = vpop.f32.mrf.mxu1 }
  0xd2   : > { %580 = vst [vmem:[%s1009_s14 + $0x28] sm:$0xff] %v547_v53 }
  0xd3   : > { %815 = vst [vmem:[%s1017_s19 + $0x10] sm:$0xff] %v787_v52  }
  0xd6   : > { %v422_v54 = vpop.f32.mrf.mxu2 }
  0xd7   : > { %v807_v55 = vpack.c.bf16 %v422_v54, %v420_v49  ;;  %v567_v56 = vpop.f32.mrf.mxu3 }
  0xd8   : > { %588 = vst [vmem:[%s1009_s14 + $0x68] sm:$0xff] %v567_v56  ;;  %v405_v57 = vpop.f32.mrf.mxu0 }
  0xd9   : > { %819 = vst [vmem:[%s1017_s19 + $0x30] sm:$0xff] %v807_v55   ;;  %v550_v58 = vpop.f32.mrf.mxu1 }
  0xda   : > { %581 = vst [vmem:[%s1009_s14 + $0x30] sm:$0xff] %v550_v58 }
  0xde   : > { %v425_v59 = vpop.f32.mrf.mxu2 }
  0xdf   : > { %v570_v60 = vpop.f32.mrf.mxu3 }
  0xe0   : > { %589 = vst [vmem:[%s1009_s14 + $0x70] sm:$0xff] %v570_v60  ;;  %v407_v61 = vpop.f32.mrf.mxu0 }
  0xe1   : > { %v792_v62 = vpack.c.bf16 %v407_v61, %v405_v57  ;;  %v552_v63 = vpop.f32.mrf.mxu1 }
  0xe2   : > { %582 = vst [vmem:[%s1009_s14 + $0x38] sm:$0xff] %v552_v63 }
  0xe3   : > { %816 = vst [vmem:[%s1017_s19 + $0x18] sm:$0xff] %v792_v62  }
  0xe6   : > { %v427_v0 = vpop.f32.mrf.mxu2 }
  0xe7   : > { %v812_v1 = vpack.c.bf16 %v427_v0, %v425_v59  ;;  %v572_v2 = vpop.f32.mrf.mxu3 }
  0xe8   : > { %590 = vst [vmem:[%s1009_s14 + $0x78] sm:$0xff] %v572_v2 }
  0xe9   : > { %820 = vst [vmem:[%s1017_s19 + $0x38] sm:$0xff] %v812_v1  }
  0xea PF: > { %s16_s18 = sadd.s32 1, %s851_s18  }
  0xeb   : > { %p13_p4 = scmp.ge.s32.totalorder %s16_s18, 4  }
  0xed   :  { %15 = sbr.rel (!%p13_p4) target bundleno = 1 (0x1), region = 78 }

// kernel: gcn_forward.14
= control target key start
LH: loop header
LB: loop body
LE: loop exit
PB: predicated region body
PF: predicated region fallthrough
CT: control target
= control target key end

     0   :  { %s920_s21 = smov 0   ;;  %s1102_s0 = inlined_call_operand.vmem [shape: f32[256,128], index: 0, kind: input, shape index: {}]   ;;  %s1103_s1 = inlined_call_operand.vmem [shape: f32[2,128], index: 1, kind: input, shape index: {}]   ;;  %s1104_s2 = inlined_call_operand.vmem [shape: bf16[128,128], index: 2, kind: input, shape index: {}]   ;;  %s1105_s3 = inlined_call_operand.vmem [shape: bf16[128,128], index: 3, kind: input, shape index: {}]   ;;  %s1106_s4 = inlined_call_operand.vmem [shape: f32[1,128], index: 4, kind: input, shape index: {}]   ;;  %s1107_s5 = inlined_call_operand.vmem [shape: bf16[256,128], index: 5, kind: output, shape index: {0}]   ;;  %s1108_s6 = inlined_call_operand.vmem [shape: f32[256,128], index: 6, kind: output, shape index: {1}]  }
   0x1 LB: > { %s712_s22 = sadd.s32 4294967295, %s883_s21   ;;  %p716_p0 = scmp.ge.s32.totalorder %s883_s21, 1  ;;  %s883_s21 = sphi %s920_s21, %s17_s21  }
   0x2   : > { %p216_p1 = scmp.lt.s32.totalorder %s883_s21, 3 }
   0x4   : > { %p217_p2 = pnand %p716_p0, %p216_p1 }
   0x5   : > { %s717_s27 = sshll.u32 (!%p217_p2), %s712_s22, 4 }
   0x6   : > { %220 = sbr.rel (%p217_p2) target bundleno = 235 (0xeb), region = 40  ;;  %p252_p3 = scmp.lt.s32.totalorder (!%p217_p2), %s717_s27, 31 }
   0xb   : > { %v796_v0 = vld [vmem:[%s1104_s2 + $0x38] sm:$0xff]  ;;  %v795_v2 = vld [vmem:[%s1104_s2 + $0x30] sm:$0xff]  ;;  %s1110_s27 = smov (!%p252_p3, %s717_s27), 31  ;;  %v794_v4 = vld [vmem:[%s1104_s2 + $0x28] sm:$0xff] }
   0xc   : > { %v804_v1 = vld [vmem:[%s1105_s3 + $0x38] sm:$0xff]  ;;  %408 = vmatpush.bf16.msra.mxu0 %v796_v0  ;;  %852 = vmatpush.bf16.msra.mxu2 %v796_v0  ;;  %v803_v3 = vld [vmem:[%s1105_s3 + $0x30] sm:$0xff]  ;;  %v802_v5 = vld [vmem:[%s1105_s3 + $0x28] sm:$0xff]  ;;  %s718_s12 = sshll.u32 %s1110_s27, 3  ;;  %s720_s23 = sshll.u32 %s1110_s27, 2 }
   0xd   : > { %557 = vmatpush.bf16.msra.mxu1 %v804_v1  ;;  %860 = vmatpush.bf16.msra.mxu3 %v804_v1  ;;  %v793_v6 = vld [vmem:[%s1104_s2 + $0x20] sm:$0xff]  ;;  %s957_s17 = scalar_lea.vmem %s1102_s0, %s718_s12  ;;  %v792_v9 = vld [vmem:[%s1104_s2 + $0x18] sm:$0xff]  ;;  %v791_v21 = vld [vmem:[%s1104_s2 + $0x10] sm:$0xff]  ;;  %s1051_s22 = scalar_lea.vmem %s1108_s6, %s718_s12 }
   0xe   : > { %v285_v7 = vld [vmem:[%s1103_s1] sm:$0x3]  ;;  %v270_v12 = vld [vmem:[%s957_s17 + $0x8] sm:$0xff]  ;;  %v800_v15 = vld [vmem:[%s1105_s3 + $0x18] sm:$0xff]  ;;  %s1060_s26 = scalar_lea.vmem %s1107_s5, %s720_s23 }
   0xf   : > { %v801_v8 = vld [vmem:[%s1105_s3 + $0x20] sm:$0xff]  ;;  %v969_v11 = vperm.slane %v285_v7, 0  ;;  %v278_v14 = vld [vmem:[%s957_s17 + $0x48] sm:$0xff]  ;;  %v977_v16 = vperm.slane %v285_v7, 1  ;;  %v799_v22 = vld [vmem:[%s1105_s3 + $0x10] sm:$0xff] }
  0x10   : > { %409 = vmatpush.bf16.msra.mxu0 %v795_v2  ;;  %853 = vmatpush.bf16.msra.mxu2 %v795_v2  ;;  %v269_v10 = vld [vmem:[%s957_s17] sm:$0xff]  ;;  %v790_v27 = vld [vmem:[%s1104_s2 + $0x8] sm:$0xff]  ;;  %v271_v37 = vld [vmem:[%s957_s17 + $0x10] sm:$0xff] }
  0x11   : > { %558 = vmatpush.bf16.msra.mxu1 %v803_v3  ;;  %861 = vmatpush.bf16.msra.mxu3 %v803_v3  ;;  %v277_v13 = vld [vmem:[%s957_s17 + $0x40] sm:$0xff]  ;;  %v287_v17 = vmul.f32 %v969_v11, %v269_v10  ;;  %v288_v18 = vmul.f32 %v969_v11, %v270_v12  ;;  %v296_v20 = vmul.f32 %v969_v11, %v278_v14  ;;  %v798_v28 = vld [vmem:[%s1105_s3 + $0x8] sm:$0xff]  ;;  %v272_v38 = vld [vmem:[%s957_s17 + $0x18] sm:$0xff] }
  0x12   : > { %v295_v19 = vmul.f32 %v969_v11, %v277_v13  ;;  %v789_v33 = vld [vmem:[%s1104_s2] sm:$0xff]  ;;  %v279_v39 = vld [vmem:[%s957_s17 + $0x50] sm:$0xff]  ;;  %v280_v40 = vld [vmem:[%s957_s17 + $0x58] sm:$0xff]  ;;  %v289_v41 = vmul.f32 %v969_v11, %v271_v37  ;;  %v290_v42 = vmul.f32 %v969_v11, %v272_v38 }
  0x13   : > { %v304_v23 = vadd.f32 %v977_v16, %v287_v17  ;;  %v305_v24 = vadd.f32 %v977_v16, %v288_v18  ;;  %v313_v26 = vadd.f32 %v977_v16, %v296_v20  ;;  %v797_v34 = vld [vmem:[%s1105_s3] sm:$0xff]  ;;  %v297_v43 = vmul.f32 %v969_v11, %v279_v39  ;;  %v274_v56 = vld [vmem:[%s957_s17 + $0x28] sm:$0xff]  ;;  %v276_v10 = vld [vmem:[%s957_s17 + $0x38] sm:$0xff] }
  0x14   : > { %410 = vmatpush.bf16.msra.mxu0 %v794_v4  ;;  %854 = vmatpush.bf16.msra.mxu2 %v794_v4  ;;  %v312_v25 = vadd.f32 %v977_v16, %v295_v19  ;;  %v298_v44 = vmul.f32 %v969_v11, %v280_v40  ;;  %v306_v45 = vadd.f32 %v977_v16, %v289_v41  ;;  %v273_v55 = vld [vmem:[%s957_s17 + $0x20] sm:$0xff]  ;;  %v282_v58 = vld [vmem:[%s957_s17 + $0x68] sm:$0xff]  ;;  %v283_v12 = vld [vmem:[%s957_s17 + $0x70] sm:$0xff] }
  0x15   : > { %559 = vmatpush.bf16.msra.mxu1 %v802_v5  ;;  %862 = vmatpush.bf16.msra.mxu3 %v802_v5  ;;  %v320_v29 = vmax.f32 %v304_v23, 0.0  ;;  %v321_v30 = vmax.f32 %v305_v24, 0.0  ;;  %v329_v32 = vmax.f32 %v313_v26, 0.0  ;;  %v307_v46 = vadd.f32 %v977_v16, %v290_v42  ;;  %v281_v57 = vld [vmem:[%s957_s17 + $0x60] sm:$0xff]  ;;  %v284_v13 = vld [vmem:[%s957_s17 + $0x78] sm:$0xff] }
  0x16   : > { %v328_v31 = vmax.f32 %v312_v25, 0.0  ;;  %v314_v47 = vadd.f32 %v977_v16, %v297_v43  ;;  %v315_v48 = vadd.f32 %v977_v16, %v298_v44  ;;  %v322_v49 = vmax.f32 %v306_v45, 0.0 }
  0x17   : > { %v336_v35 = vpack.c.bf16 %v321_v30, %v320_v29  ;;  %v323_v50 = vmax.f32 %v307_v46, 0.0  ;;  %v291_v59 = vmul.f32 %v969_v11, %v273_v55  ;;  %v292_v60 = vmul.f32 %v969_v11, %v274_v56 }
  0x18   : > { %411 = vmatpush.bf16.msra.mxu0 %v793_v6  ;;  %855 = vmatpush.bf16.msra.mxu2 %v793_v6  ;;  %v340_v36 = vpack.c.bf16 %v329_v32, %v328_v31  ;;  %v330_v51 = vmax.f32 %v314_v47, 0.0  ;;  %v331_v52 = vmax.f32 %v315_v48, 0.0  ;;  %v299_v61 = vmul.f32 %v969_v11, %v281_v57 }
  0x19   : > { %560 = vmatpush.bf16.msra.mxu1 %v801_v8  ;;  %863 = vmatpush.bf16.msra.mxu3 %v801_v8  ;;  %v337_v53 = vpack.c.bf16 %v323_v50, %v322_v49  ;;  %v300_v62 = vmul.f32 %v969_v11, %v282_v58  ;;  %v308_v63 = vadd.f32 %v977_v16, %v291_v59 }
  0x1a   : > { %v341_v54 = vpack.c.bf16 %v331_v52, %v330_v51  ;;  %v309_v0 = vadd.f32 %v977_v16, %v292_v60  ;;  %v316_v1 = vadd.f32 %v977_v16, %v299_v61  ;;  %v301_v17 = vmul.f32 %v969_v11, %v283_v12 }
  0x1b   : > { %v317_v2 = vadd.f32 %v977_v16, %v300_v62  ;;  %v324_v3 = vmax.f32 %v308_v63, 0.0  ;;  %v302_v18 = vmul.f32 %v969_v11, %v284_v13 }
  0x1c   : > { %412 = vmatpush.bf16.msra.mxu0 %v792_v9  ;;  %856 = vmatpush.bf16.msra.mxu2 %v792_v9  ;;  %v325_v4 = vmax.f32 %v309_v0, 0.0  ;;  %v332_v5 = vmax.f32 %v316_v1, 0.0  ;;  %v275_v9 = vld [vmem:[%s957_s17 + $0x30] sm:$0xff] }
  0x1d   : > { %561 = vmatpush.bf16.msra.mxu1 %v800_v15  ;;  %864 = vmatpush.bf16.msra.mxu3 %v800_v15  ;;  %v333_v6 = vmax.f32 %v317_v2, 0.0  ;;  %v293_v14 = vmul.f32 %v969_v11, %v275_v9  ;;  %v294_v15 = vmul.f32 %v969_v11, %v276_v10  ;;  %v1044_v11 = vld [vmem:[%s1106_s4] ss:$0 sm:$0xff] }
  0x1e   : > { %v338_v7 = vpack.c.bf16 %v325_v4, %v324_v3 }
  0x1f   : > { %v342_v8 = vpack.c.bf16 %v333_v6, %v332_v5  ;;  %v310_v19 = vadd.f32 %v977_v16, %v293_v14  ;;  %v311_v20 = vadd.f32 %v977_v16, %v294_v15 }
  0x20   : > { %413 = vmatpush.bf16.msra.mxu0 %v791_v21  ;;  %857 = vmatpush.bf16.msra.mxu2 %v791_v21  ;;  %v318_v21 = vadd.f32 %v977_v16, %v301_v17 }
  0x21   : > { %562 = vmatpush.bf16.msra.mxu1 %v799_v22  ;;  %865 = vmatpush.bf16.msra.mxu3 %v799_v22  ;;  %v319_v22 = vadd.f32 %v977_v16, %v302_v18  ;;  %v326_v23 = vmax.f32 %v310_v19, 0.0  ;;  %v327_v24 = vmax.f32 %v311_v20, 0.0 }
  0x22   : > { %v334_v25 = vmax.f32 %v318_v21, 0.0 }
  0x23   : > { %v335_v26 = vmax.f32 %v319_v22, 0.0 }
  0x24   : > { %414 = vmatpush.bf16.msra.mxu0 %v790_v27  ;;  %858 = vmatpush.bf16.msra.mxu2 %v790_v27  ;;  %v339_v27 = vpack.c.bf16 %v327_v24, %v326_v23 }
  0x25   : > { %563 = vmatpush.bf16.msra.mxu1 %v798_v28  ;;  %866 = vmatpush.bf16.msra.mxu3 %v798_v28  ;;  %v343_v28 = vpack.c.bf16 %v335_v26, %v334_v25 }
  0x28   : > { %415 = vmatpush.bf16.msra.mxu0 %v789_v33  ;;  %859 = vmatpush.bf16.msra.mxu2 %v789_v33 }
  0x29   : > { %564 = vmatpush.bf16.msra.mxu1 %v797_v34  ;;  %867 = vmatpush.bf16.msra.mxu3 %v797_v34 }
  0x2b   : > { %416 = vmatmul.bf16.vlgmr.msra.gmra.mxu0 %v336_v35  ;;  %436 = vmatmul.bf16.vlgmr.msra.gmra.mxu2 %v340_v36 }
  0x2c   : > { %565 = vmatmul.bf16.vlgmr.msra.gmra.mxu1 %v336_v35  ;;  %585 = vmatmul.bf16.vlgmr.msra.gmra.mxu3 %v340_v36 }
  0x3b   : > { %421 = vmatmul.bf16.gmra.mxu0 %v337_v53  ;;  %441 = vmatmul.bf16.gmra.mxu2 %v341_v54 }
  0x3c   : > { %570 = vmatmul.bf16.gmra.mxu1 %v337_v53  ;;  %590 = vmatmul.bf16.gmra.mxu3 %v341_v54 }
  0x4b   : > { %426 = vmatmul.bf16.gmra.mxu0 %v338_v7  ;;  %446 = vmatmul.bf16.gmra.mxu2 %v342_v8 }
  0x4c   : > { %575 = vmatmul.bf16.gmra.mxu1 %v338_v7  ;;  %595 = vmatmul.bf16.gmra.mxu3 %v342_v8 }
  0x5b   : > { %431 = vmatmul.bf16.gmra.mxu0 %v339_v27  ;;  %451 = vmatmul.bf16.gmra.mxu2 %v343_v28 }
  0x5c   : > { %580 = vmatmul.bf16.gmra.mxu1 %v339_v27  ;;  %600 = vmatmul.bf16.gmra.mxu3 %v343_v28 }
  0xa8   : > { %v417_v29 = vpop.f32.mrf.mxu0 }
  0xa9   : > { %v566_v16 = vpop.f32.mrf.mxu1 }
  0xaa   : > { %v567_v30 = vadd.f32 %v1044_v11, %v566_v16 }
  0xac   : > { %606 = vst [vmem:[%s1051_s22] sm:$0xff] %v567_v30 }
  0xae   : > { %v437_v31 = vpop.f32.mrf.mxu2 }
  0xaf   : > { %v586_v32 = vpop.f32.mrf.mxu3 }
  0xb0   : > { %v587_v33 = vadd.f32 %v1044_v11, %v586_v32  ;;  %v419_v34 = vpop.f32.mrf.mxu0 }
  0xb1   : > { %v808_v35 = vpack.c.bf16 %v419_v34, %v417_v29  ;;  %v568_v36 = vpop.f32.mrf.mxu1 }
  0xb2   : > { %614 = vst [vmem:[%s1051_s22 + $0x40] sm:$0xff] %v587_v33  ;;  %v569_v37 = vadd.f32 %v1044_v11, %v568_v36 }
  0xb3   : > { %809 = vst [vmem:[%s1060_s26] sm:$0xff] %v808_v35  }
  0xb4   : > { %607 = vst [vmem:[%s1051_s22 + $0x8] sm:$0xff] %v569_v37 }
  0xb6   : > { %v439_v38 = vpop.f32.mrf.mxu2 }
  0xb7   : > { %v828_v39 = vpack.c.bf16 %v439_v38, %v437_v31  ;;  %v588_v40 = vpop.f32.mrf.mxu3 }
  0xb8   : > { %v589_v41 = vadd.f32 %v1044_v11, %v588_v40  ;;  %v422_v42 = vpop.f32.mrf.mxu0 }
  0xb9   : > { %848 = vst [vmem:[%s1060_s26 + $0x20] sm:$0xff] %v828_v39   ;;  %v571_v43 = vpop.f32.mrf.mxu1 }
  0xba   : > { %615 = vst [vmem:[%s1051_s22 + $0x48] sm:$0xff] %v589_v41  ;;  %v572_v44 = vadd.f32 %v1044_v11, %v571_v43 }
  0xbc   : > { %608 = vst [vmem:[%s1051_s22 + $0x10] sm:$0xff] %v572_v44 }
  0xbe   : > { %v442_v45 = vpop.f32.mrf.mxu2 }
  0xbf   : > { %v591_v46 = vpop.f32.mrf.mxu3 }
  0xc0   : > { %v592_v47 = vadd.f32 %v1044_v11, %v591_v46  ;;  %v424_v48 = vpop.f32.mrf.mxu0 }
  0xc1   : > { %v813_v49 = vpack.c.bf16 %v424_v48, %v422_v42  ;;  %v573_v50 = vpop.f32.mrf.mxu1 }
  0xc2   : > { %616 = vst [vmem:[%s1051_s22 + $0x50] sm:$0xff] %v592_v47  ;;  %v574_v51 = vadd.f32 %v1044_v11, %v573_v50 }
  0xc3   : > { %845 = vst [vmem:[%s1060_s26 + $0x8] sm:$0xff] %v813_v49  }
  0xc4   : > { %609 = vst [vmem:[%s1051_s22 + $0x18] sm:$0xff] %v574_v51 }
  0xc6   : > { %v444_v52 = vpop.f32.mrf.mxu2 }
  0xc7   : > { %v833_v53 = vpack.c.bf16 %v444_v52, %v442_v45  ;;  %v593_v54 = vpop.f32.mrf.mxu3 }
  0xc8   : > { %v594_v55 = vadd.f32 %v1044_v11, %v593_v54  ;;  %v427_v56 = vpop.f32.mrf.mxu0 }
  0xc9   : > { %849 = vst [vmem:[%s1060_s26 + $0x28] sm:$0xff] %v833_v53   ;;  %v576_v57 = vpop.f32.mrf.mxu1 }
  0xca   : > { %617 = vst [vmem:[%s1051_s22 + $0x58] sm:$0xff] %v594_v55  ;;  %v577_v58 = vadd.f32 %v1044_v11, %v576_v57 }
  0xcc   : > { %610 = vst [vmem:[%s1051_s22 + $0x20] sm:$0xff] %v577_v58 }
  0xce   : > { %v447_v59 = vpop.f32.mrf.mxu2 }
  0xcf   : > { %v596_v60 = vpop.f32.mrf.mxu3 }
  0xd0   : > { %v597_v61 = vadd.f32 %v1044_v11, %v596_v60  ;;  %v429_v62 = vpop.f32.mrf.mxu0 }
  0xd1   : > { %v818_v63 = vpack.c.bf16 %v429_v62, %v427_v56  ;;  %v578_v0 = vpop.f32.mrf.mxu1 }
  0xd2   : > { %618 = vst [vmem:[%s1051_s22 + $0x60] sm:$0xff] %v597_v61  ;;  %v579_v1 = vadd.f32 %v1044_v11, %v578_v0 }
  0xd3   : > { %846 = vst [vmem:[%s1060_s26 + $0x10] sm:$0xff] %v818_v63  }
  0xd4   : > { %611 = vst [vmem:[%s1051_s22 + $0x28] sm:$0xff] %v579_v1 }
  0xd6   : > { %v449_v2 = vpop.f32.mrf.mxu2 }
  0xd7   : > { %v838_v3 = vpack.c.bf16 %v449_v2, %v447_v59  ;;  %v598_v4 = vpop.f32.mrf.mxu3 }
  0xd8   : > { %v599_v5 = vadd.f32 %v1044_v11, %v598_v4  ;;  %v432_v6 = vpop.f32.mrf.mxu0 }
  0xd9   : > { %850 = vst [vmem:[%s1060_s26 + $0x30] sm:$0xff] %v838_v3   ;;  %v581_v7 = vpop.f32.mrf.mxu1 }
  0xda   : > { %619 = vst [vmem:[%s1051_s22 + $0x68] sm:$0xff] %v599_v5  ;;  %v582_v8 = vadd.f32 %v1044_v11, %v581_v7 }
  0xdc   : > { %612 = vst [vmem:[%s1051_s22 + $0x30] sm:$0xff] %v582_v8 }
  0xde   : > { %v452_v9 = vpop.f32.mrf.mxu2 }
  0xdf   : > { %v601_v10 = vpop.f32.mrf.mxu3 }
  0xe0   : > { %v602_v12 = vadd.f32 %v1044_v11, %v601_v10  ;;  %v434_v13 = vpop.f32.mrf.mxu0 }
  0xe1   : > { %v823_v14 = vpack.c.bf16 %v434_v13, %v432_v6  ;;  %v583_v15 = vpop.f32.mrf.mxu1 }
  0xe2   : > { %620 = vst [vmem:[%s1051_s22 + $0x70] sm:$0xff] %v602_v12  ;;  %v584_v17 = vadd.f32 %v1044_v11, %v583_v15 }
  0xe3   : > { %847 = vst [vmem:[%s1060_s26 + $0x18] sm:$0xff] %v823_v14  }
  0xe4   : > { %613 = vst [vmem:[%s1051_s22 + $0x38] sm:$0xff] %v584_v17 }
  0xe6   : > { %v454_v18 = vpop.f32.mrf.mxu2 }
  0xe7   : > { %v843_v19 = vpack.c.bf16 %v454_v18, %v452_v9  ;;  %v603_v20 = vpop.f32.mrf.mxu3 }
  0xe8   : > { %v604_v21 = vadd.f32 %v1044_v11, %v603_v20 }
  0xe9   : > { %851 = vst [vmem:[%s1060_s26 + $0x38] sm:$0xff] %v843_v19  }
  0xea   : > { %621 = vst [vmem:[%s1051_s22 + $0x78] sm:$0xff] %v604_v21 }
  0xeb PF: > { %s17_s21 = sadd.s32 1, %s883_s21  }
  0xec   : > { %p14_p4 = scmp.ge.s32.totalorder %s17_s21, 4  }
  0xee   :  { %16 = sbr.rel (!%p14_p4) target bundleno = 1 (0x1), region = 82 }

// kernel: gcn_forward.15
= control target key start
LH: loop header
LB: loop body
LE: loop exit
PB: predicated region body
PF: predicated region fallthrough
CT: control target
= control target key end

     0   :  { %s1362_s0 = inlined_call_operand.vmem [shape: bf16[256,256], index: 0, kind: input, shape index: {}]   ;;  %s1363_s1 = inlined_call_operand.vmem [shape: bf16[256,128], index: 1, kind: input, shape index: {}]   ;;  %s1364_s2 = inlined_call_operand.vmem [shape: f32[256,128], index: 2, kind: input, shape index: {}]   ;;  %s1365_s3 = inlined_call_operand.hbm [shape: f32[256,128], index: 3, kind: output, shape index: {}]  }
   0x1   :  { %1368 = sst [smem:[#allocation8_spill]] %s1362_s0 }
   0x2   :  { %8 = vsyncpa [#allocation5], 0 }
   0x3   :  { %10 = vsyncpa [#allocation5 + $0x1], 0  ;;  %s1122_s12 = smov 0   ;;  %s1124_s13 = smov 0  }
   0x4   :  { %s1126_s14 = smov 0   ;;  %s1128_s15 = smov 0  }
   0x5   :  { %s1130_s16 = smov 0   ;;  %s1132_s17 = smov 0  }
   0x6   :  { %s1134_s18 = smov 0   ;;  %s1136_s19 = smov 0  }
   0x7   :  { %s1138_s20 = smov 0   ;;  %s1140_s21 = smov 0  }
   0x8 LB: > { %s769_s22 = sadd.s32 4294967295, %s1097_s21   ;;  %s770_s23 = sadd.s32 4294967294, %s1097_s21   ;;  %s1097_s21 = sphi %s1140_s21, %s16_s21   ;;  %s1093_s20 = sphi %s1138_s20, %s1384_s20   ;;  %s1089_s19 = sphi %s1136_s19, %s1383_s19   ;;  %s1085_s18 = sphi %s1134_s18, %s1382_s18   ;;  %s1081_s17 = sphi %s1132_s17, %s1381_s17   ;;  %s1077_s16 = sphi %s1130_s16, %s1380_s16   ;;  %s1073_s15 = sphi %s1128_s15, %s1379_s15   ;;  %s1069_s14 = sphi %s1126_s14, %s1378_s14   ;;  %s1065_s13 = sphi %s1124_s13, %s1377_s13   ;;  %s1061_s12 = sphi %s1122_s12, %s1376_s12  }
   0x9   : > { %s25_s24 = sadd.s32 1, %s1089_s19  ;;  %s28_s25 = sadd.s32 1, %s1093_s20 }
   0xa   : > { %p26_p0 = scmp.ge.s32.totalorder %s25_s24, 2  ;;  %s37_s26 = sadd.s32 1, %s1077_s16 }
   0xb   : > { %p44_p1 = scmp.ne.s32.totalorder %s1077_s16, %s1073_s15  ;;  %p45_p2 = scmp.eq.s32.totalorder %s1097_s21, 0 }
   0xc   : > { %s1386_s24 = smov (%p26_p0, %s25_s24), 0  ;;  %s1388_s25 = smov (!%p26_p0, %s28_s25), %s1093_s20 }
   0xd   : > { %s33_s27 = ssub.s32 %s1089_s19, %s1386_s24  ;;  %p1185_p3 = por %p45_p2, %p44_p1 }
   0xe   : > { %p30_p4 = scmp.ge.s32.totalorder %s1388_s25, 2  ;;  %s115_s29 = sadd.s32 1, %s1069_s14 }
   0xf   : > { %p125_p5 = scmp.ne.s32.totalorder %s1069_s14, %s1065_s13  ;;  %p126_p6 = scmp.eq.s32.totalorder %s769_s22, 3 }
  0x10   : > { %s1390_s25 = smov (%p30_p4, %s1388_s25), 0  ;;  %p131_p8 = scmp.ne.s32.totalorder %s1065_s13, %s1061_s12 }
  0x11   : > { %1370 = sst [smem:[#allocation7_spill]] %s1390_s25  ;;  %p1194_p7 = por %p126_p6, %p125_p5 }
  0x12   : > { %s32_s4 = ssub.s32 %s1093_s20, %s1390_s25  ;;  %p132_p9 = scmp.eq.s32.totalorder %s770_s23, 3 }
  0x13   : > { %s34_s5 = sor.u32 %s33_s27, %s32_s4  ;;  %p113_p10 = scmp.eq.s32.totalorder %s32_s4, 0 }
  0x14   : > { %p35_p11 = scmp.eq.s32.totalorder %s34_s5, 0  ;;  %p1202_p12 = por %p132_p9, %p131_p8 }
  0x15   : > { %s1207_s7 = scalar_select %p113_p10, %s1069_s14, %s115_s29  }
  0x16   : > { %s1210_s8 = scalar_select %p35_p11, %s1077_s16, %s37_s26  }
  0x17   : > { %p772_p13 = scmp.ge.s32.totalorder %s1097_s21, 4 }
  0x19   : > { %148 = sbr.rel (%p772_p13) target bundleno = 56 (0x38), region = 16 }
  0x1e   : > { %151 = sbr.rel (!%p1185_p3) target bundleno = 56 (0x38), region = 20  ;;  %s153_s9 = sand.u32 (%p1185_p3), 1, %s1077_s16  }
  0x1f   : > { %s855_s10 = sshll.u32 (%p1185_p3), %s1093_s20, 5  ;;  %s773_s11 = sshll.u32 (%p1185_p3), %s153_s9, 6 }
  0x20   : > { %s158_s22 = sadd.s32 (%p1185_p3), %s1089_s19, %s855_s10  ;;  %s1373_s0 = sld [smem:[#allocation8_spill]] (%p1185_p3) }
  0x21   : > { %s776_s23 = sshll.u32 (%p1185_p3), %s158_s22, 2  ;;  %s155_s26 = scalar_lea.vmem (%p1185_p3), [#allocation3], %s773_s11 }
  0x26   : > { %s1221_s29 = scalar_lea.vmem %s1373_s0, %s776_s23 }
  0x27   : > { %v177_v0 = vld [vmem:[%s1221_s29] sm:$0xf]  ;;  %v179_v1 = vld [vmem:[%s1221_s29 + $0x8] sm:$0xf]  ;;  %v181_v2 = vld [vmem:[%s1221_s29 + $0x10] sm:$0xf] }
  0x28   : > { %178 = vst [vmem:[%s155_s26] sm:$0xf] %v177_v0  ;;  %v183_v3 = vld [vmem:[%s1221_s29 + $0x18] sm:$0xf]  ;;  %v185_v4 = vld [vmem:[%s1221_s29 + $0x20] sm:$0xf] }
  0x29   : > { %180 = vst [vmem:[%s155_s26 + $0x4] sm:$0xf] %v179_v1  ;;  %v187_v5 = vld [vmem:[%s1221_s29 + $0x28] sm:$0xf]  ;;  %v189_v6 = vld [vmem:[%s1221_s29 + $0x30] sm:$0xf] }
  0x2a   : > { %182 = vst [vmem:[%s155_s26 + $0x8] sm:$0xf] %v181_v2  ;;  %v191_v7 = vld [vmem:[%s1221_s29 + $0x38] sm:$0xf]  ;;  %v193_v8 = vld [vmem:[%s1221_s29 + $0x40] sm:$0xf] }
  0x2b   : > { %184 = vst [vmem:[%s155_s26 + $0xc] sm:$0xf] %v183_v3  ;;  %v195_v9 = vld [vmem:[%s1221_s29 + $0x48] sm:$0xf]  ;;  %v197_v10 = vld [vmem:[%s1221_s29 + $0x50] sm:$0xf] }
  0x2c   : > { %186 = vst [vmem:[%s155_s26 + $0x10] sm:$0xf] %v185_v4  ;;  %v199_v11 = vld [vmem:[%s1221_s29 + $0x58] sm:$0xf]  ;;  %v201_v12 = vld [vmem:[%s1221_s29 + $0x60] sm:$0xf] }
  0x2d   : > { %188 = vst [vmem:[%s155_s26 + $0x14] sm:$0xf] %v187_v5  ;;  %v203_v13 = vld [vmem:[%s1221_s29 + $0x68] sm:$0xf]  ;;  %v205_v14 = vld [vmem:[%s1221_s29 + $0x70] sm:$0xf] }
  0x2e   : > { %190 = vst [vmem:[%s155_s26 + $0x18] sm:$0xf] %v189_v6  ;;  %v207_v15 = vld [vmem:[%s1221_s29 + $0x78] sm:$0xf] }
  0x2f   : > { %192 = vst [vmem:[%s155_s26 + $0x1c] sm:$0xf] %v191_v7 }
  0x30   : > { %194 = vst [vmem:[%s155_s26 + $0x20] sm:$0xf] %v193_v8 }
  0x31   : > { %196 = vst [vmem:[%s155_s26 + $0x24] sm:$0xf] %v195_v9 }
  0x32   : > { %198 = vst [vmem:[%s155_s26 + $0x28] sm:$0xf] %v197_v10 }
  0x33   : > { %200 = vst [vmem:[%s155_s26 + $0x2c] sm:$0xf] %v199_v11 }
  0x34   : > { %202 = vst [vmem:[%s155_s26 + $0x30] sm:$0xf] %v201_v12 }
  0x35   : > { %204 = vst [vmem:[%s155_s26 + $0x34] sm:$0xf] %v203_v13 }
  0x36   : > { %206 = vst [vmem:[%s155_s26 + $0x38] sm:$0xf] %v205_v14 }
  0x37   : > { %208 = vst [vmem:[%s155_s26 + $0x3c] sm:$0xf] %v207_v15 }
  0x38 PF: > { %p777_p0 = scmp.ge.s32.totalorder %s1097_s21, 1  ;;  %p281_p1 = scmp.lt.s32.totalorder %s1097_s21, 5 }
  0x3a   : > { %p282_p2 = pnand %p777_p0, %p281_p1 }
  0x3b   : > { %s288_s28 = sand.u32 (!%p282_p2), 1, %s1073_s15   ;;  %s1367_s5 = sand.u32 (!%p282_p2), 1, %s1065_s13  }
  0x3c   : > { %285 = sbr.rel (%p282_p2) target bundleno = 318 (0x13e), region = 69  ;;  %s778_s9 = sshll.u32 (!%p282_p2), %s288_s28, 6 }
  0x3d   : > { %s779_s10 = sshll.u32 (!%p282_p2), %s1367_s5, 7  ;;  %s780_s11 = sshll.u32 (!%p282_p2), %s1081_s17, 4 }
  0x3e   : > { %s782_s22 = sshll.u32 (!%p282_p2), %s1085_s18, 4  ;;  %p323_p3 = scmp.lt.s32.totalorder (!%p282_p2), %s780_s11, 31 }
  0x3f   : > { %p329_p4 = scmp.lt.s32.totalorder (!%p282_p2), %s782_s22, 31  ;;  %s1257_s28 = scalar_lea.vmem (!%p282_p2), [#allocation3], %s778_s9 }
  0x40   : > { %s1259_s5 = scalar_lea.vmem (!%p282_p2), [#allocation4], %s779_s10  ;;  %p784_p5 = scmp.ne.s32.totalorder (!%p282_p2), %s1081_s17, 0 }
  0x41   : > { %s1392_s11 = smov (!%p323_p3, %s780_s11), 31  ;;  %s1394_s22 = smov (!%p329_p4, %s782_s22), 31 }
  0x42   : > { %s781_s23 = sshll.u32 %s1392_s11, 2  ;;  %s783_s26 = sshll.u32 %s1394_s22, 3 }
  0x43   : > { %s1250_s29 = scalar_lea.vmem %s1363_s1, %s781_s23  ;;  %s1255_s15 = scalar_lea.vmem %s1364_s2, %s783_s26 }
  0x44   : > { %338 = sbr.rel (%p784_p5) target bundleno = 90 (0x5a), region = 77 }
  0x49   : > { %v1099_v16 = vmov 0.0  }
  0x4a   : > { %339 = vst [vmem:[#allocation2 + $0x30] sm:$0xff] %v1099_v16 }
  0x4b   : > { %340 = vst [vmem:[#allocation2] sm:$0xff] %v1099_v16 }
  0x4c   : > { %341 = vst [vmem:[#allocation2 + $0x58] sm:$0xff] %v1099_v16 }
  0x4d   : > { %342 = vst [vmem:[#allocation2 + $0x18] sm:$0xff] %v1099_v16 }
  0x4e   : > { %343 = vst [vmem:[#allocation2 + $0x50] sm:$0xff] %v1099_v16 }
  0x4f   : > { %344 = vst [vmem:[#allocation2 + $0x68] sm:$0xff] %v1099_v16 }
  0x50   : > { %345 = vst [vmem:[#allocation2 + $0x8] sm:$0xff] %v1099_v16 }
  0x51   : > { %346 = vst [vmem:[#allocation2 + $0x48] sm:$0xff] %v1099_v16 }
  0x52   : > { %347 = vst [vmem:[#allocation2 + $0x40] sm:$0xff] %v1099_v16 }
  0x53   : > { %348 = vst [vmem:[#allocation2 + $0x20] sm:$0xff] %v1099_v16 }
  0x54   : > { %349 = vst [vmem:[#allocation2 + $0x10] sm:$0xff] %v1099_v16 }
  0x55   : > { %350 = vst [vmem:[#allocation2 + $0x38] sm:$0xff] %v1099_v16 }
  0x56   : > { %351 = vst [vmem:[#allocation2 + $0x60] sm:$0xff] %v1099_v16 }
  0x57   : > { %352 = vst [vmem:[#allocation2 + $0x70] sm:$0xff] %v1099_v16 }
  0x58   : > { %353 = vst [vmem:[#allocation2 + $0x78] sm:$0xff] %v1099_v16 }
  0x59   : > { %354 = vst [vmem:[#allocation2 + $0x28] sm:$0xff] %v1099_v16 }
  0x5a PF: > { %v871_v17 = vld [vmem:[%s1250_s29 + $0x38] sm:$0xff]  ;;  %v870_v18 = vld [vmem:[%s1250_s29 + $0x30] sm:$0xff]  ;;  %v869_v19 = vld [vmem:[%s1250_s29 + $0x28] sm:$0xff]  ;;  %p849_p6 = scmp.ne.s32.totalorder %s1081_s17, 1 }
  0x5b   : > { %499 = vmatpush.bf16.msra.mxu0 %v871_v17  ;;  %873 = vmatpush.bf16.msra.mxu1 %v871_v17  ;;  %v868_v20 = vld [vmem:[%s1250_s29 + $0x20] sm:$0xff]  ;;  %v867_v21 = vld [vmem:[%s1250_s29 + $0x18] sm:$0xff]  ;;  %v866_v22 = vld [vmem:[%s1250_s29 + $0x10] sm:$0xff] }
  0x5c   : > { %874 = vmatpush.bf16.msra.mxu2 %v871_v17  ;;  %875 = vmatpush.bf16.msra.mxu3 %v871_v17  ;;  %v865_v23 = vld [vmem:[%s1250_s29 + $0x8] sm:$0xff]  ;;  %v864_v24 = vld [vmem:[%s1250_s29] sm:$0xff]  ;;  %v858_v26 = vld [vmem:[%s1257_s28 + $0x10] sm:$0xff] }
  0x5d   : > { %v856_v25 = vld [vmem:[%s1257_s28] sm:$0xff]  ;;  %v862_v28 = vld [vmem:[%s1257_s28 + $0x30] sm:$0xff]  ;;  %v857_v29 = vld [vmem:[%s1257_s28 + $0x8] sm:$0xff] }
  0x5e   : > { %v860_v27 = vld [vmem:[%s1257_s28 + $0x20] sm:$0xff]  ;;  %v859_v30 = vld [vmem:[%s1257_s28 + $0x18] sm:$0xff]  ;;  %v861_v31 = vld [vmem:[%s1257_s28 + $0x28] sm:$0xff] }
  0x5f   : > { %500 = vmatpush.bf16.msra.mxu0 %v870_v18  ;;  %876 = vmatpush.bf16.msra.mxu1 %v870_v18  ;;  %v863_v32 = vld [vmem:[%s1257_s28 + $0x38] sm:$0xff]  ;;  %v355_v33 = vld [vmem:[#allocation2 + $0x30] sm:$0xff]  ;;  %v363_v39 = vld [vmem:[#allocation2 + $0x40] sm:$0xff] }
  0x60   : > { %877 = vmatpush.bf16.msra.mxu2 %v870_v18  ;;  %878 = vmatpush.bf16.msra.mxu3 %v870_v18  ;;  %v359_v34 = vld [vmem:[#allocation2 + $0x50] sm:$0xff]  ;;  %v367_v40 = vld [vmem:[#allocation2 + $0x60] sm:$0xff]  ;;  %v360_v42 = vld [vmem:[#allocation2 + $0x68] sm:$0xff] }
  0x61   : > { %v356_v41 = vld [vmem:[#allocation2] sm:$0xff]  ;;  %v368_v52 = vld [vmem:[#allocation2 + $0x70] sm:$0xff]  ;;  %v357_v53 = vld [vmem:[#allocation2 + $0x58] sm:$0xff] }
  0x62   : > { %v364_v51 = vld [vmem:[#allocation2 + $0x20] sm:$0xff]  ;;  %v361_v54 = vld [vmem:[#allocation2 + $0x8] sm:$0xff]  ;;  %v365_v63 = vld [vmem:[#allocation2 + $0x10] sm:$0xff] }
  0x63   : > { %501 = vmatpush.bf16.msra.mxu0 %v869_v19  ;;  %879 = vmatpush.bf16.msra.mxu1 %v869_v19  ;;  %v369_v0 = vld [vmem:[#allocation2 + $0x78] sm:$0xff]  ;;  %v362_v2 = vld [vmem:[#allocation2 + $0x48] sm:$0xff] }
  0x64   : > { %880 = vmatpush.bf16.msra.mxu2 %v869_v19  ;;  %881 = vmatpush.bf16.msra.mxu3 %v869_v19  ;;  %v358_v1 = vld [vmem:[#allocation2 + $0x18] sm:$0xff]  ;;  %v370_v12 = vld [vmem:[#allocation2 + $0x28] sm:$0xff] }
  0x65   : > { %v366_v11 = vld [vmem:[#allocation2 + $0x38] sm:$0xff] }
  0x67   : > { %502 = vmatpush.bf16.msra.mxu0 %v868_v20  ;;  %882 = vmatpush.bf16.msra.mxu1 %v868_v20 }
  0x68   : > { %883 = vmatpush.bf16.msra.mxu2 %v868_v20  ;;  %884 = vmatpush.bf16.msra.mxu3 %v868_v20 }
  0x6b   : > { %503 = vmatpush.bf16.msra.mxu0 %v867_v21  ;;  %885 = vmatpush.bf16.msra.mxu1 %v867_v21 }
  0x6c   : > { %886 = vmatpush.bf16.msra.mxu2 %v867_v21  ;;  %887 = vmatpush.bf16.msra.mxu3 %v867_v21 }
  0x6f   : > { %504 = vmatpush.bf16.msra.mxu0 %v866_v22  ;;  %888 = vmatpush.bf16.msra.mxu1 %v866_v22 }
  0x70   : > { %889 = vmatpush.bf16.msra.mxu2 %v866_v22  ;;  %890 = vmatpush.bf16.msra.mxu3 %v866_v22 }
  0x73   : > { %505 = vmatpush.bf16.msra.mxu0 %v865_v23  ;;  %891 = vmatpush.bf16.msra.mxu1 %v865_v23 }
  0x74   : > { %892 = vmatpush.bf16.msra.mxu2 %v865_v23  ;;  %893 = vmatpush.bf16.msra.mxu3 %v865_v23 }
  0x77   : > { %506 = vmatpush.bf16.msra.mxu0 %v864_v24  ;;  %894 = vmatpush.bf16.msra.mxu1 %v864_v24 }
  0x78   : > { %895 = vmatpush.bf16.msra.mxu2 %v864_v24  ;;  %896 = vmatpush.bf16.msra.mxu3 %v864_v24 }
  0x7a   : > { %507 = vmatmul.bf16.vlgmr.msra.gmra.mxu0 %v856_v25  ;;  %517 = vmatmul.bf16.vlgmr.msra.gmra.mxu1 %v858_v26 }
  0x7b   : > { %527 = vmatmul.bf16.vlgmr.msra.gmra.mxu2 %v860_v27  ;;  %537 = vmatmul.bf16.vlgmr.msra.gmra.mxu3 %v862_v28 }
  0x8a   : > { %512 = vmatmul.bf16.gmra.mxu0 %v857_v29  ;;  %522 = vmatmul.bf16.gmra.mxu1 %v859_v30 }
  0x8b   : > { %532 = vmatmul.bf16.gmra.mxu2 %v861_v31  ;;  %542 = vmatmul.bf16.gmra.mxu3 %v863_v32 }
  0xf7   : > { %v508_v35 = vpop.f32.mrf.mxu0  ;;  %v518_v36 = vpop.f32.mrf.mxu1 }
  0xf8   : > { %v548_v37 = vadd.f32 %v508_v35, %v355_v33  ;;  %v552_v38 = vadd.f32 %v518_v36, %v359_v34 }
  0xfa   : > { %564 = vst [vmem:[#allocation2 + $0x30] sm:$0xff] %v548_v37 }
  0xfb   : > { %568 = vst [vmem:[#allocation2 + $0x50] sm:$0xff] %v552_v38 }
  0xfe   : > { %v528_v43 = vpop.f32.mrf.mxu2  ;;  %v538_v44 = vpop.f32.mrf.mxu3 }
  0xff   : > { %v556_v45 = vadd.f32 %v528_v43, %v363_v39  ;;  %v560_v46 = vadd.f32 %v538_v44, %v367_v40  ;;  %v510_v47 = vpop.f32.mrf.mxu0  ;;  %v520_v48 = vpop.f32.mrf.mxu1 }
 0x100   : > { %v549_v49 = vadd.f32 %v510_v47, %v356_v41  ;;  %v553_v50 = vadd.f32 %v520_v48, %v360_v42 }
 0x101   : > { %572 = vst [vmem:[#allocation2 + $0x40] sm:$0xff] %v556_v45 }
 0x102   : > { %576 = vst [vmem:[#allocation2 + $0x60] sm:$0xff] %v560_v46 }
 0x103   : > { %565 = vst [vmem:[#allocation2] sm:$0xff] %v549_v49 }
 0x104   : > { %569 = vst [vmem:[#allocation2 + $0x68] sm:$0xff] %v553_v50 }
 0x106   : > { %v530_v55 = vpop.f32.mrf.mxu2  ;;  %v540_v56 = vpop.f32.mrf.mxu3 }
 0x107   : > { %v557_v57 = vadd.f32 %v530_v55, %v364_v51  ;;  %v561_v58 = vadd.f32 %v540_v56, %v368_v52  ;;  %v513_v59 = vpop.f32.mrf.mxu0  ;;  %v523_v60 = vpop.f32.mrf.mxu1 }
 0x108   : > { %v550_v61 = vadd.f32 %v513_v59, %v357_v53  ;;  %v554_v62 = vadd.f32 %v523_v60, %v361_v54 }
 0x109   : > { %573 = vst [vmem:[#allocation2 + $0x20] sm:$0xff] %v557_v57 }
 0x10a   : > { %577 = vst [vmem:[#allocation2 + $0x70] sm:$0xff] %v561_v58 }
 0x10b   : > { %566 = vst [vmem:[#allocation2 + $0x58] sm:$0xff] %v550_v61 }
 0x10c   : > { %570 = vst [vmem:[#allocation2 + $0x8] sm:$0xff] %v554_v62 }
 0x10e   : > { %v533_v3 = vpop.f32.mrf.mxu2  ;;  %v543_v4 = vpop.f32.mrf.mxu3 }
 0x10f   : > { %v558_v5 = vadd.f32 %v533_v3, %v365_v63  ;;  %v562_v6 = vadd.f32 %v543_v4, %v369_v0  ;;  %v515_v7 = vpop.f32.mrf.mxu0  ;;  %v525_v8 = vpop.f32.mrf.mxu1 }
 0x110   : > { %v551_v9 = vadd.f32 %v515_v7, %v358_v1  ;;  %v555_v10 = vadd.f32 %v525_v8, %v362_v2 }
 0x111   : > { %574 = vst [vmem:[#allocation2 + $0x10] sm:$0xff] %v558_v5 }
 0x112   : > { %578 = vst [vmem:[#allocation2 + $0x78] sm:$0xff] %v562_v6 }
 0x113   : > { %567 = vst [vmem:[#allocation2 + $0x18] sm:$0xff] %v551_v9 }
 0x114   : > { %571 = vst [vmem:[#allocation2 + $0x48] sm:$0xff] %v555_v10 }
 0x116   : > { %v535_v13 = vpop.f32.mrf.mxu2  ;;  %v545_v14 = vpop.f32.mrf.mxu3  ;;  %583 = sbr.rel (%p849_p6) target bundleno = 302 (0x12e), region = 81 }
 0x117   : > { %v559_v15 = vadd.f32 %v535_v13, %v366_v11  ;;  %v563_v16 = vadd.f32 %v545_v14, %v370_v12 }
 0x119   : > { %575 = vst [vmem:[#allocation2 + $0x38] sm:$0xff] %v559_v15 }
 0x11a   : > { %579 = vst [vmem:[#allocation2 + $0x28] sm:$0xff] %v563_v16 }
 0x11b   : > { %v584_v17 = vld [vmem:[#allocation2 + $0x30] sm:$0xff]  ;;  %v600_v18 = vld [vmem:[%s1255_s15] sm:$0xff]  ;;  %v601_v21 = vld [vmem:[%s1255_s15 + $0x8] sm:$0xff] }
 0x11c   : > { %v585_v19 = vld [vmem:[#allocation2] sm:$0xff]  ;;  %v616_v20 = vadd.f32 %v600_v18, %v584_v17  ;;  %v586_v22 = vld [vmem:[#allocation2 + $0x58] sm:$0xff]  ;;  %v602_v23 = vld [vmem:[%s1255_s15 + $0x10] sm:$0xff] }
 0x11d   : > { %v617_v24 = vadd.f32 %v601_v21, %v585_v19  ;;  %v618_v25 = vadd.f32 %v602_v23, %v586_v22  ;;  %v587_v26 = vld [vmem:[#allocation2 + $0x18] sm:$0xff]  ;;  %v588_v28 = vld [vmem:[#allocation2 + $0x50] sm:$0xff]  ;;  %v604_v30 = vld [vmem:[%s1255_s15 + $0x20] sm:$0xff] }
 0x11e   : > { %v603_v27 = vld [vmem:[%s1255_s15 + $0x18] sm:$0xff]  ;;  %632 = vst [vmem:[%s1259_s5] sm:$0xff] %v616_v20  ;;  %v589_v31 = vld [vmem:[#allocation2 + $0x68] sm:$0xff]  ;;  %v620_v33 = vadd.f32 %v604_v30, %v588_v28  ;;  %v606_v36 = vld [vmem:[%s1255_s15 + $0x30] sm:$0xff] }
 0x11f   : > { %v619_v29 = vadd.f32 %v603_v27, %v587_v26  ;;  %v605_v32 = vld [vmem:[%s1255_s15 + $0x28] sm:$0xff]  ;;  %633 = vst [vmem:[%s1259_s5 + $0x8] sm:$0xff] %v617_v24  ;;  %v607_v39 = vld [vmem:[%s1255_s15 + $0x38] sm:$0xff]  ;;  %v592_v40 = vld [vmem:[#allocation2 + $0x40] sm:$0xff] }
 0x120   : > { %v621_v34 = vadd.f32 %v605_v32, %v589_v31  ;;  %v590_v35 = vld [vmem:[#allocation2 + $0x8] sm:$0xff]  ;;  %634 = vst [vmem:[%s1259_s5 + $0x10] sm:$0xff] %v618_v25  ;;  %v608_v41 = vld [vmem:[%s1255_s15 + $0x40] sm:$0xff]  ;;  %v594_v45 = vld [vmem:[#allocation2 + $0x10] sm:$0xff] }
 0x121   : > { %v591_v37 = vld [vmem:[#allocation2 + $0x48] sm:$0xff]  ;;  %v622_v38 = vadd.f32 %v606_v36, %v590_v35  ;;  %635 = vst [vmem:[%s1259_s5 + $0x18] sm:$0xff] %v619_v29  ;;  %v593_v43 = vld [vmem:[#allocation2 + $0x20] sm:$0xff]  ;;  %v624_v46 = vadd.f32 %v608_v41, %v592_v40  ;;  %v610_v47 = vld [vmem:[%s1255_s15 + $0x50] sm:$0xff] }
 0x122   : > { %v623_v42 = vadd.f32 %v607_v39, %v591_v37  ;;  %v609_v44 = vld [vmem:[%s1255_s15 + $0x48] sm:$0xff]  ;;  %636 = vst [vmem:[%s1259_s5 + $0x20] sm:$0xff] %v620_v33  ;;  %v595_v48 = vld [vmem:[#allocation2 + $0x38] sm:$0xff]  ;;  %v596_v51 = vld [vmem:[#allocation2 + $0x60] sm:$0xff]  ;;  %v626_v53 = vadd.f32 %v610_v47, %v594_v45 }
 0x123   : > { %v611_v49 = vld [vmem:[%s1255_s15 + $0x58] sm:$0xff]  ;;  %637 = vst [vmem:[%s1259_s5 + $0x28] sm:$0xff] %v621_v34  ;;  %v625_v50 = vadd.f32 %v609_v44, %v593_v43  ;;  %v612_v52 = vld [vmem:[%s1255_s15 + $0x60] sm:$0xff]  ;;  %v597_v54 = vld [vmem:[#allocation2 + $0x70] sm:$0xff] }
 0x124   : > { %638 = vst [vmem:[%s1259_s5 + $0x30] sm:$0xff] %v622_v38  ;;  %v613_v55 = vld [vmem:[%s1255_s15 + $0x68] sm:$0xff]  ;;  %v627_v56 = vadd.f32 %v611_v49, %v595_v48  ;;  %v598_v57 = vld [vmem:[#allocation2 + $0x78] sm:$0xff]  ;;  %v614_v58 = vld [vmem:[%s1255_s15 + $0x70] sm:$0xff]  ;;  %v628_v59 = vadd.f32 %v612_v52, %v596_v51 }
 0x125   : > { %639 = vst [vmem:[%s1259_s5 + $0x38] sm:$0xff] %v623_v42  ;;  %v599_v60 = vld [vmem:[#allocation2 + $0x28] sm:$0xff]  ;;  %v615_v61 = vld [vmem:[%s1255_s15 + $0x78] sm:$0xff]  ;;  %v629_v62 = vadd.f32 %v613_v55, %v597_v54  ;;  %v630_v63 = vadd.f32 %v614_v58, %v598_v57 }
 0x126   : > { %640 = vst [vmem:[%s1259_s5 + $0x40] sm:$0xff] %v624_v46  ;;  %v631_v0 = vadd.f32 %v615_v61, %v599_v60 }
 0x127   : > { %641 = vst [vmem:[%s1259_s5 + $0x48] sm:$0xff] %v625_v50 }
 0x128   : > { %642 = vst [vmem:[%s1259_s5 + $0x50] sm:$0xff] %v626_v53 }
 0x129   : > { %643 = vst [vmem:[%s1259_s5 + $0x58] sm:$0xff] %v627_v56 }
 0x12a   : > { %644 = vst [vmem:[%s1259_s5 + $0x60] sm:$0xff] %v628_v59 }
 0x12b   : > { %645 = vst [vmem:[%s1259_s5 + $0x68] sm:$0xff] %v629_v62 }
 0x12c   : > { %646 = vst [vmem:[%s1259_s5 + $0x70] sm:$0xff] %v630_v63 }
 0x12d   : > { %647 = vst [vmem:[%s1259_s5 + $0x78] sm:$0xff] %v631_v0 }
 0x12e PF: > { %s872_s0 = sshll.u32 %s1085_s18, 7  ;;  %s661_s10 = sshll.u32 %s1259_s5, 4  ;;  %s662_s10 = int_to_ptr.vmem [resolvable:$true] %s661_s10 }
 0x12f   : > { %s660_s9 = scalar_lea.hbm %s1365_s3, %s872_s0  ;;  %s1374_s22 = sand.u32 1, %s1065_s13  }
 0x130   : > { %s663_s11 = sshll.u32 %s660_s9, 4  ;;  %s649_s23 = scalar_lea.sflag [#allocation5], %s1374_s22  ;;  %s664_s11 = int_to_ptr.hbm [resolvable:$true] %s663_s11 }
 0x131   : > { %s1001_s27 = sshra.s32 %s664_s11, 4  ;;  %s1007_s18 = scalar_lea.hbm %s1365_s3, 256  ;;  %s1002_s27 = int_to_ptr.hbm [resolvable:$true] %s1001_s27 }
 0x132   : > { %s1003_s4 = scalar_lea.hbm %s1002_s27, 128  ;;  %p1008_p11 = scmp.lt.s32.totalorder %s1002_s27, %s1365_s3 }
 0x133   : > { %p1004_p8 = scmp.ne.s32.totalorder %s1002_s27, %s1003_s4  ;;  %p1009_p13 = scmp.lt.s32.totalorder %s1007_s18, %s1003_s4 }
 0x135   : > { %p1005_p9 = pnand %p1004_p8, %p1194_p7  ;;  %p1010_p0 = por %p1009_p13, %p1008_p11 }
 0x137   : > { %p1006_p10 = pneg %p1005_p9 }
 0x139   : > { %p1011_p1 = pnand %p1010_p0, %p1006_p10 }
 0x13b   : > { %1014 = shalt.err (!%p1011_p1)
}
 0x13c   : > { %s1100_s5 = smov 128   ;;  %s1101_s0 = smov 8  }
 0x13d   : > { %897 = dma.vmem_to_hbm [thread:$0]  (%p1194_p7), %s662_s10, 2048, %s664_s11, %s649_s23, %s1100_s5, %s1100_s5, %s1101_s0  }
 0x13e PF: > { %p903_p2 = scmp.ge.s32.totalorder %s1097_s21, 2  ;;  %s678_s17 = sand.u32 1, %s1061_s12  }
 0x13f   : > { %s679_s25 = scalar_lea.sflag [#allocation5], %s678_s17 }
 0x140   : > { %p900_p3 = pnand %p903_p2, %p1202_p12 }
 0x142   : > { %p901_p4 = pneg %p900_p3 }
 0x144   : > { %1056 = dma.done.wait (%p901_p4), %s679_s25, 2048  }
 0x145   : > { %1058 = vsyncadd (%p901_p4), %s679_s25, 4294965248  ;;  %s16_s21 = sadd.s32 1, %s1097_s21   ;;  %s1375_s30 = sld [smem:[#allocation7_spill]] }
 0x146   : > { %p13_p5 = scmp.ge.s32.totalorder %s16_s21, 6   ;;  %s1376_s12 = smov %s1065_s13 }
 0x147   : > { %s1377_s13 = smov %s1069_s14  ;;  %s1378_s14 = smov %s1207_s7 }
 0x148   : > { %s1379_s15 = smov %s1077_s16  ;;  %s1380_s16 = smov %s1210_s8 }
 0x149   : > { %s1381_s17 = smov %s1089_s19  ;;  %s1382_s18 = smov %s1093_s20 }
 0x14a   : > { %s1383_s19 = smov %s1386_s24  ;;  %15 = sbr.rel (!%p13_p5) target bundleno = 8 (0x8), region = 127 }
 0x14b   : > { %s1384_s20 = smov %s1375_s30 }
 0x14f   :  { %685 = vsyncpa [#allocation5], 1 }
 0x150   :  { %687 = vsyncpa [#allocation5 + $0x1], 1 }

</bundles_post_ra>
